<compile_context>
chip_gen: v5e
topology: v5e:2x2
jax: 0.10.0
libtpu: 0.0.40
codegen_flags: <defaults>
</compile_context>

<pallas_src>
import functools

import numpy as np

import jax
import jax.numpy as jnp
from jax import lax
from jax.experimental import pallas as pl
from jax.experimental.pallas import tpu as pltpu


# ----------------------------------------------------------------------------
# Fused kernel: stacked LSTM over the whole sequence + LayerNorm + flatten.
# ----------------------------------------------------------------------------
def _encoder_lstm_kernel(x_ref, wx_ref, wh_ref, b_ref, g_ref, beta_ref,
                         out_ref, xp_ref, *, num_layers, eps):
    """x_ref:    (T, B, H)     time-major embedded input
       wx_ref:   (L, H, 4H)    input->gate weights (transposed), order [i,f,o,g]
       wh_ref:   (L, H, 4H)    hidden->gate weights (transposed), same order
       b_ref:    (L, 1, 4H)    fused bias (b_ih + b_hh), same order
       g_ref:    (1, H)        LayerNorm gamma (shared for h_n and c_n)
       beta_ref: (1, H)        LayerNorm beta
       out_ref:  (B, 2*L*H)    per row: [ln(h_0)|...|ln(h_{L-1})|ln(c_0)|...]
       xp_ref:   (T, B, 4H)    VMEM scratch: staged layer-0 input projection
    """
    T, B, H = x_ref.shape
    L = num_layers

    # ---- Stage 1: batched layer-0 input projection (off the serial path).
    x2d = x_ref[...].reshape(T * B, H)
    xp = (jnp.dot(x2d, wx_ref[0], preferred_element_type=jnp.float32)
          + b_ref[0])                                        # (T*B, 4H)
    xp_ref[...] = xp.reshape(T, B, 4 * H)

    # ---- Stage 2: serial recurrence (latency-bound; keep the chain short).
    def cell(gates, c_prev):
        sig = jax.nn.sigmoid(gates[:, :3 * H])               # i, f, o together
        g_g = jnp.tanh(gates[:, 3 * H:])                     # g gate
        i_g = sig[:, 0 * H:1 * H]
        f_g = sig[:, 1 * H:2 * H]
        o_g = sig[:, 2 * H:3 * H]
        c_new = f_g * c_prev + i_g * g_g
        h_new = o_g * jnp.tanh(c_new)
        return h_new, c_new

    def step(t, carry):
        hs, cs = carry
        new_hs, new_cs = [], []
        # Layer 0: x-projection already staged in xp_ref; only h-recurrence.
        gates0 = xp_ref[t] + jnp.dot(hs[0], wh_ref[0],
                                     preferred_element_type=jnp.float32)
        h_new, c_new = cell(gates0, cs[0])
        new_hs.append(h_new)
        new_cs.append(c_new)
        inp = h_new
        for l in range(1, L):
            # Split x/h matmuls: the h-part depends only on the previous step
            # and overlaps with the lower layer's compute for this step.
            gates = (jnp.dot(hs[l], wh_ref[l],
                             preferred_element_type=jnp.float32)
                     + b_ref[l]
                     + jnp.dot(inp, wx_ref[l],
                               preferred_element_type=jnp.float32))
            h_new, c_new = cell(gates, cs[l])
            new_hs.append(h_new)
            new_cs.append(c_new)
            inp = h_new
        return tuple(new_hs), tuple(new_cs)

    zeros = tuple(jnp.zeros((B, H), jnp.float32) for _ in range(L))
    hs, cs = lax.fori_loop(0, T, step, (zeros, zeros), unroll=True)

    # ---- Stage 3: shared LayerNorm + permute/flatten (lane concat).
    def layer_norm(v):
        mu = jnp.mean(v, axis=-1, keepdims=True)
        var = jnp.mean(jnp.square(v - mu), axis=-1, keepdims=True)
        return (v - mu) * lax.rsqrt(var + eps) * g_ref[...] + beta_ref[...]

    parts = ([layer_norm(hs[l]) for l in range(L)]
             + [layer_norm(cs[l]) for l in range(L)])
    # cat((h_n,c_n)).permute(1,0,2).flatten(1)  ==  per-row concat along lanes
    out_ref[...] = jnp.concatenate(parts, axis=-1).astype(out_ref.dtype)


# ----------------------------------------------------------------------------
# Encoder forward (embedding + weight prep in JAX, everything hot in Pallas).
# ----------------------------------------------------------------------------
def encoder_forward(params, x):
    """x: (B, T, 2) float32 with [:, :, 0] = activity index, [:, :, 1] = duration."""
    B, T, _ = x.shape
    H = params["hidden_size"]
    L = params["num_layers"]

    # --- CustomDurationEmbeddingConcat (dropout = identity in eval mode) ---
    # TODO(synk): embedding gather stays in the JAX wrapper (tiny table).
    idx = x[:, :, 0].astype(jnp.int32)
    emb = jnp.take(params["emb_table"], idx, axis=0)         # (B, T, H-1)
    dur = x[:, :, 1:2]                                       # (B, T, 1)
    embedded = jnp.concatenate([emb, dur], axis=-1)          # (B, T, H)
    seq = jnp.transpose(embedded, (1, 0, 2)).astype(jnp.float32)   # (T, B, H)

    # --- host-side weight prep: transpose and reorder gates ----------------
    # PyTorch gate order is [i, f, g, o]; reorder to [i, f, o, g] so the three
    # sigmoid gates are contiguous lanes 0:3H and tanh is lanes 3H:4H.
    perm = np.concatenate([np.arange(0, 2 * H),
                           np.arange(3 * H, 4 * H),
                           np.arange(2 * H, 3 * H)])
    wx_list, wh_list, b_list = [], [], []
    for l in range(L):
        wx_list.append(params[f"w_ih_{l}"][perm].T)          # (H, 4H)
        wh_list.append(params[f"w_hh_{l}"][perm].T)          # (H, 4H)
        b_list.append((params[f"b_ih_{l}"]
                       + params[f"b_hh_{l}"])[perm].reshape(1, 4 * H))
    wx_all = jnp.stack(wx_list, axis=0)                      # (L, H, 4H)
    wh_all = jnp.stack(wh_list, axis=0)                      # (L, H, 4H)
    b_all = jnp.stack(b_list, axis=0)                        # (L, 1, 4H)

    out = pl.pallas_call(
        functools.partial(_encoder_lstm_kernel, num_layers=L, eps=1e-5),
        out_shape=jax.ShapeDtypeStruct((B, 2 * L * H), jnp.float32),
        grid=(1,),
        in_specs=[
            pl.BlockSpec((T, B, H), lambda i: (0, 0, 0)),
            pl.BlockSpec((L, H, 4 * H), lambda i: (0, 0, 0)),
            pl.BlockSpec((L, H, 4 * H), lambda i: (0, 0, 0)),
            pl.BlockSpec((L, 1, 4 * H), lambda i: (0, 0, 0)),
            pl.BlockSpec((1, H), lambda i: (0, 0)),
            pl.BlockSpec((1, H), lambda i: (0, 0)),
        ],
        out_specs=pl.BlockSpec((B, 2 * L * H), lambda i: (0, 0)),
        scratch_shapes=[pltpu.VMEM((T, B, 4 * H), jnp.float32)],
        compiler_params=pltpu.CompilerParams(
            dimension_semantics=("arbitrary",)),
    )(seq, wx_all, wh_all, b_all,
      params["ln_gamma"].reshape(1, H), params["ln_beta"].reshape(1, H))
    return out


# ----------------------------------------------------------------------------
# Pure-JAX reference (lax.scan LSTM) for correctness check.
# ----------------------------------------------------------------------------
def reference_forward(params, x):
    B, T, _ = x.shape
    H = params["hidden_size"]
    L = params["num_layers"]
    idx = x[:, :, 0].astype(jnp.int32)
    embedded = jnp.concatenate(
        [jnp.take(params["emb_table"], idx, axis=0), x[:, :, 1:2]], axis=-1)
    seq = jnp.transpose(embedded, (1, 0, 2))

    def make_step(w_ih, w_hh, b_ih, b_hh):
        def step(carry, x_t):
            h, c = carry
            g = x_t @ w_ih.T + b_ih + h @ w_hh.T + b_hh
            i, f, gg, o = jnp.split(g, 4, axis=-1)
            c = jax.nn.sigmoid(f) * c + jax.nn.sigmoid(i) * jnp.tanh(gg)
            h = jax.nn.sigmoid(o) * jnp.tanh(c)
            return (h, c), h
        return step

    h_list, c_list = [], []
    for layer in range(L):
        step = make_step(params[f"w_ih_{layer}"], params[f"w_hh_{layer}"],
                         params[f"b_ih_{layer}"], params[f"b_hh_{layer}"])
        (h, c), seq = lax.scan(step, (jnp.zeros((B, H)), jnp.zeros((B, H))), seq)
        h_list.append(h)
        c_list.append(c)
    h_n, c_n = jnp.stack(h_list), jnp.stack(c_list)

    def ln(v):
        mu = jnp.mean(v, -1, keepdims=True)
        var = jnp.mean((v - mu) ** 2, -1, keepdims=True)
        return (v - mu) / jnp.sqrt(var + 1e-5) * params["ln_gamma"] + params["ln_beta"]

    stacked = jnp.concatenate([ln(h_n), ln(c_n)], axis=0)
    return jnp.transpose(stacked, (1, 0, 2)).reshape(B, 2 * L * H)


def init_params(key, input_size, hidden_size, num_layers):
    H = hidden_size
    k = 1.0 / jnp.sqrt(H)
    params = {"hidden_size": H, "num_layers": num_layers}
    keys = jax.random.split(key, 2 + 4 * num_layers)
    params["emb_table"] = 0.1 * jax.random.normal(
        keys[0], (input_size, H - 1), jnp.float32)
    params["ln_gamma"] = jnp.ones((H,), jnp.float32)
    params["ln_beta"] = jnp.zeros((H,), jnp.float32)
    for layer in range(num_layers):
        kk = jax.random.split(keys[2 + layer], 4)
        params[f"w_ih_{layer}"] = jax.random.uniform(kk[0], (4 * H, H), jnp.float32, -k, k)
        params[f"w_hh_{layer}"] = jax.random.uniform(kk[1], (4 * H, H), jnp.float32, -k, k)
        params[f"b_ih_{layer}"] = jax.random.uniform(kk[2], (4 * H,), jnp.float32, -k, k)
        params[f"b_hh_{layer}"] = jax.random.uniform(kk[3], (4 * H,), jnp.float32, -k, k)
    return params


if __name__ == "__main__":
    B, T = 8, 8
    input_size, hidden_size, num_layers = 6, 32, 2

    key = jax.random.PRNGKey(0)
    k_idx, k_dur, k_par = jax.random.split(key, 3)
    acts = jax.random.randint(k_idx, (B, T), 0, input_size).astype(jnp.float32)
    durs = jax.random.uniform(k_dur, (B, T), jnp.float32)
    x = jnp.stack([acts, durs], axis=-1)                     # (B, T, 2)

    params = init_params(k_par, input_size, hidden_size, num_layers)

    hidden = jax.block_until_ready(encoder_forward(params, x))
    assert hidden.shape == (B, 2 * num_layers * hidden_size)

    ref = jax.block_until_ready(reference_forward(params, x))
    assert jnp.allclose(hidden, ref, atol=1e-4, rtol=1e-4), (
        float(jnp.max(jnp.abs(hidden - ref))))

    print("KERNEL_OK")
</pallas_src>

<mosaic_0001>
module attributes {stable_mosaic.version = 11 : i64} {
  func.func @_encoder_lstm_kernel(%arg0: i32, %arg1: memref<8x8x32xf32, #tpu.memory_space<vmem>>, %arg2: memref<2x32x128xf32, #tpu.memory_space<vmem>>, %arg3: memref<2x32x128xf32, #tpu.memory_space<vmem>>, %arg4: memref<2x1x128xf32, #tpu.memory_space<vmem>>, %arg5: memref<1x32xf32, #tpu.memory_space<vmem>>, %arg6: memref<1x32xf32, #tpu.memory_space<vmem>>, %arg7: memref<8x128xf32, #tpu.memory_space<vmem>>, %arg8: memref<8x8x128xf32, #tpu.memory_space<vmem>>) attributes {dimension_semantics = [#tpu.dimension_semantics<arbitrary>], iteration_bounds = array<i64: 1>, scalar_prefetch = 0 : i64, scratch_operands = 1 : i64, tpu.core_type = #tpu.core_type<tc>, window_params = [{pipeline_mode = #tpu.pipeline_mode<synchronous>, transform_indices = @transform_0, window_bounds = array<i64: 8, 8, 32>}, {pipeline_mode = #tpu.pipeline_mode<synchronous>, transform_indices = @transform_1, window_bounds = array<i64: 2, 32, 128>}, {pipeline_mode = #tpu.pipeline_mode<synchronous>, transform_indices = @transform_2, window_bounds = array<i64: 2, 32, 128>}, {pipeline_mode = #tpu.pipeline_mode<synchronous>, transform_indices = @transform_3, window_bounds = array<i64: 2, 1, 128>}, {pipeline_mode = #tpu.pipeline_mode<synchronous>, transform_indices = @transform_4, window_bounds = array<i64: 1, 32>}, {pipeline_mode = #tpu.pipeline_mode<synchronous>, transform_indices = @transform_5, window_bounds = array<i64: 1, 32>}, {pipeline_mode = #tpu.pipeline_mode<synchronous>, transform_indices = @transform_6, window_bounds = array<i64: 8, 128>}]} {
    %c0 = arith.constant 0 : index
    %c0_0 = arith.constant 0 : index
    %c0_1 = arith.constant 0 : index
    %0 = vector.load %arg1[%c0, %c0_0, %c0_1] : memref<8x8x32xf32, #tpu.memory_space<vmem>>, vector<8x8x32xf32>
    %1 = vector.shape_cast %0 : vector<8x8x32xf32> to vector<64x32xf32>
    %c0_2 = arith.constant 0 : index
    %c0_3 = arith.constant 0 : index
    %c0_4 = arith.constant 0 : index
    %2 = vector.load %arg2[%c0_2, %c0_3, %c0_4] : memref<2x32x128xf32, #tpu.memory_space<vmem>>, vector<1x32x128xf32>
    %3 = vector.shape_cast %2 : vector<1x32x128xf32> to vector<32x128xf32>
    %cst = arith.constant dense<0.000000e+00> : vector<64x128xf32>
    %4 = tpu.matmul %1, %3, %cst {dimension_numbers = #tpu.dot_dimension_numbers<[1], [0], [0], [1], [0, 0, 1, 1], [], []>} : vector<64x32xf32>, vector<32x128xf32>, vector<64x128xf32> -> vector<64x128xf32>
    %c0_5 = arith.constant 0 : index
    %c0_6 = arith.constant 0 : index
    %c0_7 = arith.constant 0 : index
    %5 = vector.load %arg4[%c0_5, %c0_6, %c0_7] : memref<2x1x128xf32, #tpu.memory_space<vmem>>, vector<1x1x128xf32>
    %6 = vector.shape_cast %5 : vector<1x1x128xf32> to vector<1x128xf32>
    %7 = vector.broadcast %6 : vector<1x128xf32> to vector<64x128xf32>
    %8 = arith.addf %4, %7 : vector<64x128xf32>
    %9 = vector.shape_cast %8 : vector<64x128xf32> to vector<8x8x128xf32>
    %c0_8 = arith.constant 0 : index
    %c0_9 = arith.constant 0 : index
    %c0_10 = arith.constant 0 : index
    %10 = vector.load %arg8[%c0_8, %c0_9, %c0_10] : memref<8x8x128xf32, #tpu.memory_space<vmem>>, vector<8x8x128xf32>
    tpu.vector_store %arg8[%c0_8, %c0_9, %c0_10], %9 {strides = array<i32>} : memref<8x8x128xf32, #tpu.memory_space<vmem>>, vector<8x8x128xf32>,
    %cst_11 = arith.constant 0.000000e+00 : f32
    %11 = vector.broadcast %cst_11 : f32 to vector<8x32xf32>
    %cst_12 = arith.constant 0.000000e+00 : f32
    %12 = vector.broadcast %cst_12 : f32 to vector<8x32xf32>
    %c0_i32 = arith.constant 0 : i32
    %13 = arith.index_cast %c0_i32 : i32 to index
    %c0_13 = arith.constant 0 : index
    %c0_14 = arith.constant 0 : index
    %14 = vector.load %arg8[%13, %c0_13, %c0_14] : memref<8x8x128xf32, #tpu.memory_space<vmem>>, vector<1x8x128xf32>
    %15 = vector.shape_cast %14 : vector<1x8x128xf32> to vector<8x128xf32>
    %c0_15 = arith.constant 0 : index
    %c0_16 = arith.constant 0 : index
    %c0_17 = arith.constant 0 : index
    %16 = vector.load %arg3[%c0_15, %c0_16, %c0_17] : memref<2x32x128xf32, #tpu.memory_space<vmem>>, vector<1x32x128xf32>
    %17 = vector.shape_cast %16 : vector<1x32x128xf32> to vector<32x128xf32>
    %cst_18 = arith.constant dense<0.000000e+00> : vector<8x128xf32>
    %18 = tpu.matmul %11, %17, %cst_18 {dimension_numbers = #tpu.dot_dimension_numbers<[1], [0], [0], [1], [0, 0, 1, 1], [], []>} : vector<8x32xf32>, vector<32x128xf32>, vector<8x128xf32> -> vector<8x128xf32>
    %19 = arith.addf %15, %18 : vector<8x128xf32>
    %20 = vector.extract_strided_slice %19 {offsets = [0, 0], sizes = [8, 96], strides = [1, 1]} : vector<8x128xf32> to vector<8x96xf32>
    %21 = arith.negf %20 : vector<8x96xf32>
    %22 = math.exp %21 : vector<8x96xf32>
    %cst_19 = arith.constant 1.000000e+00 : f32
    %23 = vector.broadcast %cst_19 : f32 to vector<8x96xf32>
    %24 = arith.addf %23, %22 : vector<8x96xf32>
    %25 = arith.divf %23, %24 : vector<8x96xf32>
    %26 = vector.extract_strided_slice %19 {offsets = [0, 96], sizes = [8, 32], strides = [1, 1]} : vector<8x128xf32> to vector<8x32xf32>
    %27 = math.tanh %26 : vector<8x32xf32>
    %28 = vector.extract_strided_slice %25 {offsets = [0, 0], sizes = [8, 32], strides = [1, 1]} : vector<8x96xf32> to vector<8x32xf32>
    %29 = vector.extract_strided_slice %25 {offsets = [0, 32], sizes = [8, 32], strides = [1, 1]} : vector<8x96xf32> to vector<8x32xf32>
    %30 = vector.extract_strided_slice %25 {offsets = [0, 64], sizes = [8, 32], strides = [1, 1]} : vector<8x96xf32> to vector<8x32xf32>
    %31 = arith.mulf %29, %11 : vector<8x32xf32>
    %32 = arith.mulf %28, %27 : vector<8x32xf32>
    %33 = arith.addf %31, %32 : vector<8x32xf32>
    %34 = math.tanh %33 : vector<8x32xf32>
    %35 = arith.mulf %30, %34 : vector<8x32xf32>
    %c1 = arith.constant 1 : index
    %c0_20 = arith.constant 0 : index
    %c0_21 = arith.constant 0 : index
    %36 = vector.load %arg3[%c1, %c0_20, %c0_21] : memref<2x32x128xf32, #tpu.memory_space<vmem>>, vector<1x32x128xf32>
    %37 = vector.shape_cast %36 : vector<1x32x128xf32> to vector<32x128xf32>
    %cst_22 = arith.constant dense<0.000000e+00> : vector<8x128xf32>
    %38 = tpu.matmul %12, %37, %cst_22 {dimension_numbers = #tpu.dot_dimension_numbers<[1], [0], [0], [1], [0, 0, 1, 1], [], []>} : vector<8x32xf32>, vector<32x128xf32>, vector<8x128xf32> -> vector<8x128xf32>
    %c1_23 = arith.constant 1 : index
    %c0_24 = arith.constant 0 : index
    %c0_25 = arith.constant 0 : index
    %39 = vector.load %arg4[%c1_23, %c0_24, %c0_25] : memref<2x1x128xf32, #tpu.memory_space<vmem>>, vector<1x1x128xf32>
    %40 = vector.shape_cast %39 : vector<1x1x128xf32> to vector<1x128xf32>
    %41 = vector.broadcast %40 : vector<1x128xf32> to vector<8x128xf32>
    %42 = arith.addf %38, %41 : vector<8x128xf32>
    %c1_26 = arith.constant 1 : index
    %c0_27 = arith.constant 0 : index
    %c0_28 = arith.constant 0 : index
    %43 = vector.load %arg2[%c1_26, %c0_27, %c0_28] : memref<2x32x128xf32, #tpu.memory_space<vmem>>, vector<1x32x128xf32>
    %44 = vector.shape_cast %43 : vector<1x32x128xf32> to vector<32x128xf32>
    %cst_29 = arith.constant dense<0.000000e+00> : vector<8x128xf32>
    %45 = tpu.matmul %35, %44, %cst_29 {dimension_numbers = #tpu.dot_dimension_numbers<[1], [0], [0], [1], [0, 0, 1, 1], [], []>} : vector<8x32xf32>, vector<32x128xf32>, vector<8x128xf32> -> vector<8x128xf32>
    %46 = arith.addf %42, %45 : vector<8x128xf32>
    %47 = vector.extract_strided_slice %46 {offsets = [0, 0], sizes = [8, 96], strides = [1, 1]} : vector<8x128xf32> to vector<8x96xf32>
    %48 = arith.negf %47 : vector<8x96xf32>
    %49 = math.exp %48 : vector<8x96xf32>
    %cst_30 = arith.constant 1.000000e+00 : f32
    %50 = vector.broadcast %cst_30 : f32 to vector<8x96xf32>
    %51 = arith.addf %50, %49 : vector<8x96xf32>
    %52 = arith.divf %50, %51 : vector<8x96xf32>
    %53 = vector.extract_strided_slice %46 {offsets = [0, 96], sizes = [8, 32], strides = [1, 1]} : vector<8x128xf32> to vector<8x32xf32>
    %54 = math.tanh %53 : vector<8x32xf32>
    %55 = vector.extract_strided_slice %52 {offsets = [0, 0], sizes = [8, 32], strides = [1, 1]} : vector<8x96xf32> to vector<8x32xf32>
    %56 = vector.extract_strided_slice %52 {offsets = [0, 32], sizes = [8, 32], strides = [1, 1]} : vector<8x96xf32> to vector<8x32xf32>
    %57 = vector.extract_strided_slice %52 {offsets = [0, 64], sizes = [8, 32], strides = [1, 1]} : vector<8x96xf32> to vector<8x32xf32>
    %58 = arith.mulf %56, %12 : vector<8x32xf32>
    %59 = arith.mulf %55, %54 : vector<8x32xf32>
    %60 = arith.addf %58, %59 : vector<8x32xf32>
    %61 = math.tanh %60 : vector<8x32xf32>
    %62 = arith.mulf %57, %61 : vector<8x32xf32>
    %c1_i32 = arith.constant 1 : i32
    %63 = arith.index_cast %c1_i32 : i32 to index
    %c0_31 = arith.constant 0 : index
    %c0_32 = arith.constant 0 : index
    %64 = vector.load %arg8[%63, %c0_31, %c0_32] : memref<8x8x128xf32, #tpu.memory_space<vmem>>, vector<1x8x128xf32>
    %65 = vector.shape_cast %64 : vector<1x8x128xf32> to vector<8x128xf32>
    %c0_33 = arith.constant 0 : index
    %c0_34 = arith.constant 0 : index
    %c0_35 = arith.constant 0 : index
    %66 = vector.load %arg3[%c0_33, %c0_34, %c0_35] : memref<2x32x128xf32, #tpu.memory_space<vmem>>, vector<1x32x128xf32>
    %67 = vector.shape_cast %66 : vector<1x32x128xf32> to vector<32x128xf32>
    %cst_36 = arith.constant dense<0.000000e+00> : vector<8x128xf32>
    %68 = tpu.matmul %35, %67, %cst_36 {dimension_numbers = #tpu.dot_dimension_numbers<[1], [0], [0], [1], [0, 0, 1, 1], [], []>} : vector<8x32xf32>, vector<32x128xf32>, vector<8x128xf32> -> vector<8x128xf32>
    %69 = arith.addf %65, %68 : vector<8x128xf32>
    %70 = vector.extract_strided_slice %69 {offsets = [0, 0], sizes = [8, 96], strides = [1, 1]} : vector<8x128xf32> to vector<8x96xf32>
    %71 = arith.negf %70 : vector<8x96xf32>
    %72 = math.exp %71 : vector<8x96xf32>
    %cst_37 = arith.constant 1.000000e+00 : f32
    %73 = vector.broadcast %cst_37 : f32 to vector<8x96xf32>
    %74 = arith.addf %73, %72 : vector<8x96xf32>
    %75 = arith.divf %73, %74 : vector<8x96xf32>
    %76 = vector.extract_strided_slice %69 {offsets = [0, 96], sizes = [8, 32], strides = [1, 1]} : vector<8x128xf32> to vector<8x32xf32>
    %77 = math.tanh %76 : vector<8x32xf32>
    %78 = vector.extract_strided_slice %75 {offsets = [0, 0], sizes = [8, 32], strides = [1, 1]} : vector<8x96xf32> to vector<8x32xf32>
    %79 = vector.extract_strided_slice %75 {offsets = [0, 32], sizes = [8, 32], strides = [1, 1]} : vector<8x96xf32> to vector<8x32xf32>
    %80 = vector.extract_strided_slice %75 {offsets = [0, 64], sizes = [8, 32], strides = [1, 1]} : vector<8x96xf32> to vector<8x32xf32>
    %81 = arith.mulf %79, %33 : vector<8x32xf32>
    %82 = arith.mulf %78, %77 : vector<8x32xf32>
    %83 = arith.addf %81, %82 : vector<8x32xf32>
    %84 = math.tanh %83 : vector<8x32xf32>
    %85 = arith.mulf %80, %84 : vector<8x32xf32>
    %c1_38 = arith.constant 1 : index
    %c0_39 = arith.constant 0 : index
    %c0_40 = arith.constant 0 : index
    %86 = vector.load %arg3[%c1_38, %c0_39, %c0_40] : memref<2x32x128xf32, #tpu.memory_space<vmem>>, vector<1x32x128xf32>
    %87 = vector.shape_cast %86 : vector<1x32x128xf32> to vector<32x128xf32>
    %cst_41 = arith.constant dense<0.000000e+00> : vector<8x128xf32>
    %88 = tpu.matmul %62, %87, %cst_41 {dimension_numbers = #tpu.dot_dimension_numbers<[1], [0], [0], [1], [0, 0, 1, 1], [], []>} : vector<8x32xf32>, vector<32x128xf32>, vector<8x128xf32> -> vector<8x128xf32>
    %c1_42 = arith.constant 1 : index
    %c0_43 = arith.constant 0 : index
    %c0_44 = arith.constant 0 : index
    %89 = vector.load %arg4[%c1_42, %c0_43, %c0_44] : memref<2x1x128xf32, #tpu.memory_space<vmem>>, vector<1x1x128xf32>
    %90 = vector.shape_cast %89 : vector<1x1x128xf32> to vector<1x128xf32>
    %91 = vector.broadcast %90 : vector<1x128xf32> to vector<8x128xf32>
    %92 = arith.addf %88, %91 : vector<8x128xf32>
    %c1_45 = arith.constant 1 : index
    %c0_46 = arith.constant 0 : index
    %c0_47 = arith.constant 0 : index
    %93 = vector.load %arg2[%c1_45, %c0_46, %c0_47] : memref<2x32x128xf32, #tpu.memory_space<vmem>>, vector<1x32x128xf32>
    %94 = vector.shape_cast %93 : vector<1x32x128xf32> to vector<32x128xf32>
    %cst_48 = arith.constant dense<0.000000e+00> : vector<8x128xf32>
    %95 = tpu.matmul %85, %94, %cst_48 {dimension_numbers = #tpu.dot_dimension_numbers<[1], [0], [0], [1], [0, 0, 1, 1], [], []>} : vector<8x32xf32>, vector<32x128xf32>, vector<8x128xf32> -> vector<8x128xf32>
    %96 = arith.addf %92, %95 : vector<8x128xf32>
    %97 = vector.extract_strided_slice %96 {offsets = [0, 0], sizes = [8, 96], strides = [1, 1]} : vector<8x128xf32> to vector<8x96xf32>
    %98 = arith.negf %97 : vector<8x96xf32>
    %99 = math.exp %98 : vector<8x96xf32>
    %cst_49 = arith.constant 1.000000e+00 : f32
    %100 = vector.broadcast %cst_49 : f32 to vector<8x96xf32>
    %101 = arith.addf %100, %99 : vector<8x96xf32>
    %102 = arith.divf %100, %101 : vector<8x96xf32>
    %103 = vector.extract_strided_slice %96 {offsets = [0, 96], sizes = [8, 32], strides = [1, 1]} : vector<8x128xf32> to vector<8x32xf32>
    %104 = math.tanh %103 : vector<8x32xf32>
    %105 = vector.extract_strided_slice %102 {offsets = [0, 0], sizes = [8, 32], strides = [1, 1]} : vector<8x96xf32> to vector<8x32xf32>
    %106 = vector.extract_strided_slice %102 {offsets = [0, 32], sizes = [8, 32], strides = [1, 1]} : vector<8x96xf32> to vector<8x32xf32>
    %107 = vector.extract_strided_slice %102 {offsets = [0, 64], sizes = [8, 32], strides = [1, 1]} : vector<8x96xf32> to vector<8x32xf32>
    %108 = arith.mulf %106, %60 : vector<8x32xf32>
    %109 = arith.mulf %105, %104 : vector<8x32xf32>
    %110 = arith.addf %108, %109 : vector<8x32xf32>
    %111 = math.tanh %110 : vector<8x32xf32>
    %112 = arith.mulf %107, %111 : vector<8x32xf32>
    %c2_i32 = arith.constant 2 : i32
    %113 = arith.index_cast %c2_i32 : i32 to index
    %c0_50 = arith.constant 0 : index
    %c0_51 = arith.constant 0 : index
    %114 = vector.load %arg8[%113, %c0_50, %c0_51] : memref<8x8x128xf32, #tpu.memory_space<vmem>>, vector<1x8x128xf32>
    %115 = vector.shape_cast %114 : vector<1x8x128xf32> to vector<8x128xf32>
    %c0_52 = arith.constant 0 : index
    %c0_53 = arith.constant 0 : index
    %c0_54 = arith.constant 0 : index
    %116 = vector.load %arg3[%c0_52, %c0_53, %c0_54] : memref<2x32x128xf32, #tpu.memory_space<vmem>>, vector<1x32x128xf32>
    %117 = vector.shape_cast %116 : vector<1x32x128xf32> to vector<32x128xf32>
    %cst_55 = arith.constant dense<0.000000e+00> : vector<8x128xf32>
    %118 = tpu.matmul %85, %117, %cst_55 {dimension_numbers = #tpu.dot_dimension_numbers<[1], [0], [0], [1], [0, 0, 1, 1], [], []>} : vector<8x32xf32>, vector<32x128xf32>, vector<8x128xf32> -> vector<8x128xf32>
    %119 = arith.addf %115, %118 : vector<8x128xf32>
    %120 = vector.extract_strided_slice %119 {offsets = [0, 0], sizes = [8, 96], strides = [1, 1]} : vector<8x128xf32> to vector<8x96xf32>
    %121 = arith.negf %120 : vector<8x96xf32>
    %122 = math.exp %121 : vector<8x96xf32>
    %cst_56 = arith.constant 1.000000e+00 : f32
    %123 = vector.broadcast %cst_56 : f32 to vector<8x96xf32>
    %124 = arith.addf %123, %122 : vector<8x96xf32>
    %125 = arith.divf %123, %124 : vector<8x96xf32>
    %126 = vector.extract_strided_slice %119 {offsets = [0, 96], sizes = [8, 32], strides = [1, 1]} : vector<8x128xf32> to vector<8x32xf32>
    %127 = math.tanh %126 : vector<8x32xf32>
    %128 = vector.extract_strided_slice %125 {offsets = [0, 0], sizes = [8, 32], strides = [1, 1]} : vector<8x96xf32> to vector<8x32xf32>
    %129 = vector.extract_strided_slice %125 {offsets = [0, 32], sizes = [8, 32], strides = [1, 1]} : vector<8x96xf32> to vector<8x32xf32>
    %130 = vector.extract_strided_slice %125 {offsets = [0, 64], sizes = [8, 32], strides = [1, 1]} : vector<8x96xf32> to vector<8x32xf32>
    %131 = arith.mulf %129, %83 : vector<8x32xf32>
    %132 = arith.mulf %128, %127 : vector<8x32xf32>
    %133 = arith.addf %131, %132 : vector<8x32xf32>
    %134 = math.tanh %133 : vector<8x32xf32>
    %135 = arith.mulf %130, %134 : vector<8x32xf32>
    %c1_57 = arith.constant 1 : index
    %c0_58 = arith.constant 0 : index
    %c0_59 = arith.constant 0 : index
    %136 = vector.load %arg3[%c1_57, %c0_58, %c0_59] : memref<2x32x128xf32, #tpu.memory_space<vmem>>, vector<1x32x128xf32>
    %137 = vector.shape_cast %136 : vector<1x32x128xf32> to vector<32x128xf32>
    %cst_60 = arith.constant dense<0.000000e+00> : vector<8x128xf32>
    %138 = tpu.matmul %112, %137, %cst_60 {dimension_numbers = #tpu.dot_dimension_numbers<[1], [0], [0], [1], [0, 0, 1, 1], [], []>} : vector<8x32xf32>, vector<32x128xf32>, vector<8x128xf32> -> vector<8x128xf32>
    %c1_61 = arith.constant 1 : index
    %c0_62 = arith.constant 0 : index
    %c0_63 = arith.constant 0 : index
    %139 = vector.load %arg4[%c1_61, %c0_62, %c0_63] : memref<2x1x128xf32, #tpu.memory_space<vmem>>, vector<1x1x128xf32>
    %140 = vector.shape_cast %139 : vector<1x1x128xf32> to vector<1x128xf32>
    %141 = vector.broadcast %140 : vector<1x128xf32> to vector<8x128xf32>
    %142 = arith.addf %138, %141 : vector<8x128xf32>
    %c1_64 = arith.constant 1 : index
    %c0_65 = arith.constant 0 : index
    %c0_66 = arith.constant 0 : index
    %143 = vector.load %arg2[%c1_64, %c0_65, %c0_66] : memref<2x32x128xf32, #tpu.memory_space<vmem>>, vector<1x32x128xf32>
    %144 = vector.shape_cast %143 : vector<1x32x128xf32> to vector<32x128xf32>
    %cst_67 = arith.constant dense<0.000000e+00> : vector<8x128xf32>
    %145 = tpu.matmul %135, %144, %cst_67 {dimension_numbers = #tpu.dot_dimension_numbers<[1], [0], [0], [1], [0, 0, 1, 1], [], []>} : vector<8x32xf32>, vector<32x128xf32>, vector<8x128xf32> -> vector<8x128xf32>
    %146 = arith.addf %142, %145 : vector<8x128xf32>
    %147 = vector.extract_strided_slice %146 {offsets = [0, 0], sizes = [8, 96], strides = [1, 1]} : vector<8x128xf32> to vector<8x96xf32>
    %148 = arith.negf %147 : vector<8x96xf32>
    %149 = math.exp %148 : vector<8x96xf32>
    %cst_68 = arith.constant 1.000000e+00 : f32
    %150 = vector.broadcast %cst_68 : f32 to vector<8x96xf32>
    %151 = arith.addf %150, %149 : vector<8x96xf32>
    %152 = arith.divf %150, %151 : vector<8x96xf32>
    %153 = vector.extract_strided_slice %146 {offsets = [0, 96], sizes = [8, 32], strides = [1, 1]} : vector<8x128xf32> to vector<8x32xf32>
    %154 = math.tanh %153 : vector<8x32xf32>
    %155 = vector.extract_strided_slice %152 {offsets = [0, 0], sizes = [8, 32], strides = [1, 1]} : vector<8x96xf32> to vector<8x32xf32>
    %156 = vector.extract_strided_slice %152 {offsets = [0, 32], sizes = [8, 32], strides = [1, 1]} : vector<8x96xf32> to vector<8x32xf32>
    %157 = vector.extract_strided_slice %152 {offsets = [0, 64], sizes = [8, 32], strides = [1, 1]} : vector<8x96xf32> to vector<8x32xf32>
    %158 = arith.mulf %156, %110 : vector<8x32xf32>
    %159 = arith.mulf %155, %154 : vector<8x32xf32>
    %160 = arith.addf %158, %159 : vector<8x32xf32>
    %161 = math.tanh %160 : vector<8x32xf32>
    %162 = arith.mulf %157, %161 : vector<8x32xf32>
    %c3_i32 = arith.constant 3 : i32
    %163 = arith.index_cast %c3_i32 : i32 to index
    %c0_69 = arith.constant 0 : index
    %c0_70 = arith.constant 0 : index
    %164 = vector.load %arg8[%163, %c0_69, %c0_70] : memref<8x8x128xf32, #tpu.memory_space<vmem>>, vector<1x8x128xf32>
    %165 = vector.shape_cast %164 : vector<1x8x128xf32> to vector<8x128xf32>
    %c0_71 = arith.constant 0 : index
    %c0_72 = arith.constant 0 : index
    %c0_73 = arith.constant 0 : index
    %166 = vector.load %arg3[%c0_71, %c0_72, %c0_73] : memref<2x32x128xf32, #tpu.memory_space<vmem>>, vector<1x32x128xf32>
    %167 = vector.shape_cast %166 : vector<1x32x128xf32> to vector<32x128xf32>
    %cst_74 = arith.constant dense<0.000000e+00> : vector<8x128xf32>
    %168 = tpu.matmul %135, %167, %cst_74 {dimension_numbers = #tpu.dot_dimension_numbers<[1], [0], [0], [1], [0, 0, 1, 1], [], []>} : vector<8x32xf32>, vector<32x128xf32>, vector<8x128xf32> -> vector<8x128xf32>
    %169 = arith.addf %165, %168 : vector<8x128xf32>
    %170 = vector.extract_strided_slice %169 {offsets = [0, 0], sizes = [8, 96], strides = [1, 1]} : vector<8x128xf32> to vector<8x96xf32>
    %171 = arith.negf %170 : vector<8x96xf32>
    %172 = math.exp %171 : vector<8x96xf32>
    %cst_75 = arith.constant 1.000000e+00 : f32
    %173 = vector.broadcast %cst_75 : f32 to vector<8x96xf32>
    %174 = arith.addf %173, %172 : vector<8x96xf32>
    %175 = arith.divf %173, %174 : vector<8x96xf32>
    %176 = vector.extract_strided_slice %169 {offsets = [0, 96], sizes = [8, 32], strides = [1, 1]} : vector<8x128xf32> to vector<8x32xf32>
    %177 = math.tanh %176 : vector<8x32xf32>
    %178 = vector.extract_strided_slice %175 {offsets = [0, 0], sizes = [8, 32], strides = [1, 1]} : vector<8x96xf32> to vector<8x32xf32>
    %179 = vector.extract_strided_slice %175 {offsets = [0, 32], sizes = [8, 32], strides = [1, 1]} : vector<8x96xf32> to vector<8x32xf32>
    %180 = vector.extract_strided_slice %175 {offsets = [0, 64], sizes = [8, 32], strides = [1, 1]} : vector<8x96xf32> to vector<8x32xf32>
    %181 = arith.mulf %179, %133 : vector<8x32xf32>
    %182 = arith.mulf %178, %177 : vector<8x32xf32>
    %183 = arith.addf %181, %182 : vector<8x32xf32>
    %184 = math.tanh %183 : vector<8x32xf32>
    %185 = arith.mulf %180, %184 : vector<8x32xf32>
    %c1_76 = arith.constant 1 : index
    %c0_77 = arith.constant 0 : index
    %c0_78 = arith.constant 0 : index
    %186 = vector.load %arg3[%c1_76, %c0_77, %c0_78] : memref<2x32x128xf32, #tpu.memory_space<vmem>>, vector<1x32x128xf32>
    %187 = vector.shape_cast %186 : vector<1x32x128xf32> to vector<32x128xf32>
    %cst_79 = arith.constant dense<0.000000e+00> : vector<8x128xf32>
    %188 = tpu.matmul %162, %187, %cst_79 {dimension_numbers = #tpu.dot_dimension_numbers<[1], [0], [0], [1], [0, 0, 1, 1], [], []>} : vector<8x32xf32>, vector<32x128xf32>, vector<8x128xf32> -> vector<8x128xf32>
    %c1_80 = arith.constant 1 : index
    %c0_81 = arith.constant 0 : index
    %c0_82 = arith.constant 0 : index
    %189 = vector.load %arg4[%c1_80, %c0_81, %c0_82] : memref<2x1x128xf32, #tpu.memory_space<vmem>>, vector<1x1x128xf32>
    %190 = vector.shape_cast %189 : vector<1x1x128xf32> to vector<1x128xf32>
    %191 = vector.broadcast %190 : vector<1x128xf32> to vector<8x128xf32>
    %192 = arith.addf %188, %191 : vector<8x128xf32>
    %c1_83 = arith.constant 1 : index
    %c0_84 = arith.constant 0 : index
    %c0_85 = arith.constant 0 : index
    %193 = vector.load %arg2[%c1_83, %c0_84, %c0_85] : memref<2x32x128xf32, #tpu.memory_space<vmem>>, vector<1x32x128xf32>
    %194 = vector.shape_cast %193 : vector<1x32x128xf32> to vector<32x128xf32>
    %cst_86 = arith.constant dense<0.000000e+00> : vector<8x128xf32>
    %195 = tpu.matmul %185, %194, %cst_86 {dimension_numbers = #tpu.dot_dimension_numbers<[1], [0], [0], [1], [0, 0, 1, 1], [], []>} : vector<8x32xf32>, vector<32x128xf32>, vector<8x128xf32> -> vector<8x128xf32>
    %196 = arith.addf %192, %195 : vector<8x128xf32>
    %197 = vector.extract_strided_slice %196 {offsets = [0, 0], sizes = [8, 96], strides = [1, 1]} : vector<8x128xf32> to vector<8x96xf32>
    %198 = arith.negf %197 : vector<8x96xf32>
    %199 = math.exp %198 : vector<8x96xf32>
    %cst_87 = arith.constant 1.000000e+00 : f32
    %200 = vector.broadcast %cst_87 : f32 to vector<8x96xf32>
    %201 = arith.addf %200, %199 : vector<8x96xf32>
    %202 = arith.divf %200, %201 : vector<8x96xf32>
    %203 = vector.extract_strided_slice %196 {offsets = [0, 96], sizes = [8, 32], strides = [1, 1]} : vector<8x128xf32> to vector<8x32xf32>
    %204 = math.tanh %203 : vector<8x32xf32>
    %205 = vector.extract_strided_slice %202 {offsets = [0, 0], sizes = [8, 32], strides = [1, 1]} : vector<8x96xf32> to vector<8x32xf32>
    %206 = vector.extract_strided_slice %202 {offsets = [0, 32], sizes = [8, 32], strides = [1, 1]} : vector<8x96xf32> to vector<8x32xf32>
    %207 = vector.extract_strided_slice %202 {offsets = [0, 64], sizes = [8, 32], strides = [1, 1]} : vector<8x96xf32> to vector<8x32xf32>
    %208 = arith.mulf %206, %160 : vector<8x32xf32>
    %209 = arith.mulf %205, %204 : vector<8x32xf32>
    %210 = arith.addf %208, %209 : vector<8x32xf32>
    %211 = math.tanh %210 : vector<8x32xf32>
    %212 = arith.mulf %207, %211 : vector<8x32xf32>
    %c4_i32 = arith.constant 4 : i32
    %213 = arith.index_cast %c4_i32 : i32 to index
    %c0_88 = arith.constant 0 : index
    %c0_89 = arith.constant 0 : index
    %214 = vector.load %arg8[%213, %c0_88, %c0_89] : memref<8x8x128xf32, #tpu.memory_space<vmem>>, vector<1x8x128xf32>
    %215 = vector.shape_cast %214 : vector<1x8x128xf32> to vector<8x128xf32>
    %c0_90 = arith.constant 0 : index
    %c0_91 = arith.constant 0 : index
    %c0_92 = arith.constant 0 : index
    %216 = vector.load %arg3[%c0_90, %c0_91, %c0_92] : memref<2x32x128xf32, #tpu.memory_space<vmem>>, vector<1x32x128xf32>
    %217 = vector.shape_cast %216 : vector<1x32x128xf32> to vector<32x128xf32>
    %cst_93 = arith.constant dense<0.000000e+00> : vector<8x128xf32>
    %218 = tpu.matmul %185, %217, %cst_93 {dimension_numbers = #tpu.dot_dimension_numbers<[1], [0], [0], [1], [0, 0, 1, 1], [], []>} : vector<8x32xf32>, vector<32x128xf32>, vector<8x128xf32> -> vector<8x128xf32>
    %219 = arith.addf %215, %218 : vector<8x128xf32>
    %220 = vector.extract_strided_slice %219 {offsets = [0, 0], sizes = [8, 96], strides = [1, 1]} : vector<8x128xf32> to vector<8x96xf32>
    %221 = arith.negf %220 : vector<8x96xf32>
    %222 = math.exp %221 : vector<8x96xf32>
    %cst_94 = arith.constant 1.000000e+00 : f32
    %223 = vector.broadcast %cst_94 : f32 to vector<8x96xf32>
    %224 = arith.addf %223, %222 : vector<8x96xf32>
    %225 = arith.divf %223, %224 : vector<8x96xf32>
    %226 = vector.extract_strided_slice %219 {offsets = [0, 96], sizes = [8, 32], strides = [1, 1]} : vector<8x128xf32> to vector<8x32xf32>
    %227 = math.tanh %226 : vector<8x32xf32>
    %228 = vector.extract_strided_slice %225 {offsets = [0, 0], sizes = [8, 32], strides = [1, 1]} : vector<8x96xf32> to vector<8x32xf32>
    %229 = vector.extract_strided_slice %225 {offsets = [0, 32], sizes = [8, 32], strides = [1, 1]} : vector<8x96xf32> to vector<8x32xf32>
    %230 = vector.extract_strided_slice %225 {offsets = [0, 64], sizes = [8, 32], strides = [1, 1]} : vector<8x96xf32> to vector<8x32xf32>
    %231 = arith.mulf %229, %183 : vector<8x32xf32>
    %232 = arith.mulf %228, %227 : vector<8x32xf32>
    %233 = arith.addf %231, %232 : vector<8x32xf32>
    %234 = math.tanh %233 : vector<8x32xf32>
    %235 = arith.mulf %230, %234 : vector<8x32xf32>
    %c1_95 = arith.constant 1 : index
    %c0_96 = arith.constant 0 : index
    %c0_97 = arith.constant 0 : index
    %236 = vector.load %arg3[%c1_95, %c0_96, %c0_97] : memref<2x32x128xf32, #tpu.memory_space<vmem>>, vector<1x32x128xf32>
    %237 = vector.shape_cast %236 : vector<1x32x128xf32> to vector<32x128xf32>
    %cst_98 = arith.constant dense<0.000000e+00> : vector<8x128xf32>
    %238 = tpu.matmul %212, %237, %cst_98 {dimension_numbers = #tpu.dot_dimension_numbers<[1], [0], [0], [1], [0, 0, 1, 1], [], []>} : vector<8x32xf32>, vector<32x128xf32>, vector<8x128xf32> -> vector<8x128xf32>
    %c1_99 = arith.constant 1 : index
    %c0_100 = arith.constant 0 : index
    %c0_101 = arith.constant 0 : index
    %239 = vector.load %arg4[%c1_99, %c0_100, %c0_101] : memref<2x1x128xf32, #tpu.memory_space<vmem>>, vector<1x1x128xf32>
    %240 = vector.shape_cast %239 : vector<1x1x128xf32> to vector<1x128xf32>
    %241 = vector.broadcast %240 : vector<1x128xf32> to vector<8x128xf32>
    %242 = arith.addf %238, %241 : vector<8x128xf32>
    %c1_102 = arith.constant 1 : index
    %c0_103 = arith.constant 0 : index
    %c0_104 = arith.constant 0 : index
    %243 = vector.load %arg2[%c1_102, %c0_103, %c0_104] : memref<2x32x128xf32, #tpu.memory_space<vmem>>, vector<1x32x128xf32>
    %244 = vector.shape_cast %243 : vector<1x32x128xf32> to vector<32x128xf32>
    %cst_105 = arith.constant dense<0.000000e+00> : vector<8x128xf32>
    %245 = tpu.matmul %235, %244, %cst_105 {dimension_numbers = #tpu.dot_dimension_numbers<[1], [0], [0], [1], [0, 0, 1, 1], [], []>} : vector<8x32xf32>, vector<32x128xf32>, vector<8x128xf32> -> vector<8x128xf32>
    %246 = arith.addf %242, %245 : vector<8x128xf32>
    %247 = vector.extract_strided_slice %246 {offsets = [0, 0], sizes = [8, 96], strides = [1, 1]} : vector<8x128xf32> to vector<8x96xf32>
    %248 = arith.negf %247 : vector<8x96xf32>
    %249 = math.exp %248 : vector<8x96xf32>
    %cst_106 = arith.constant 1.000000e+00 : f32
    %250 = vector.broadcast %cst_106 : f32 to vector<8x96xf32>
    %251 = arith.addf %250, %249 : vector<8x96xf32>
    %252 = arith.divf %250, %251 : vector<8x96xf32>
    %253 = vector.extract_strided_slice %246 {offsets = [0, 96], sizes = [8, 32], strides = [1, 1]} : vector<8x128xf32> to vector<8x32xf32>
    %254 = math.tanh %253 : vector<8x32xf32>
    %255 = vector.extract_strided_slice %252 {offsets = [0, 0], sizes = [8, 32], strides = [1, 1]} : vector<8x96xf32> to vector<8x32xf32>
    %256 = vector.extract_strided_slice %252 {offsets = [0, 32], sizes = [8, 32], strides = [1, 1]} : vector<8x96xf32> to vector<8x32xf32>
    %257 = vector.extract_strided_slice %252 {offsets = [0, 64], sizes = [8, 32], strides = [1, 1]} : vector<8x96xf32> to vector<8x32xf32>
    %258 = arith.mulf %256, %210 : vector<8x32xf32>
    %259 = arith.mulf %255, %254 : vector<8x32xf32>
    %260 = arith.addf %258, %259 : vector<8x32xf32>
    %261 = math.tanh %260 : vector<8x32xf32>
    %262 = arith.mulf %257, %261 : vector<8x32xf32>
    %c5_i32 = arith.constant 5 : i32
    %263 = arith.index_cast %c5_i32 : i32 to index
    %c0_107 = arith.constant 0 : index
    %c0_108 = arith.constant 0 : index
    %264 = vector.load %arg8[%263, %c0_107, %c0_108] : memref<8x8x128xf32, #tpu.memory_space<vmem>>, vector<1x8x128xf32>
    %265 = vector.shape_cast %264 : vector<1x8x128xf32> to vector<8x128xf32>
    %c0_109 = arith.constant 0 : index
    %c0_110 = arith.constant 0 : index
    %c0_111 = arith.constant 0 : index
    %266 = vector.load %arg3[%c0_109, %c0_110, %c0_111] : memref<2x32x128xf32, #tpu.memory_space<vmem>>, vector<1x32x128xf32>
    %267 = vector.shape_cast %266 : vector<1x32x128xf32> to vector<32x128xf32>
    %cst_112 = arith.constant dense<0.000000e+00> : vector<8x128xf32>
    %268 = tpu.matmul %235, %267, %cst_112 {dimension_numbers = #tpu.dot_dimension_numbers<[1], [0], [0], [1], [0, 0, 1, 1], [], []>} : vector<8x32xf32>, vector<32x128xf32>, vector<8x128xf32> -> vector<8x128xf32>
    %269 = arith.addf %265, %268 : vector<8x128xf32>
    %270 = vector.extract_strided_slice %269 {offsets = [0, 0], sizes = [8, 96], strides = [1, 1]} : vector<8x128xf32> to vector<8x96xf32>
    %271 = arith.negf %270 : vector<8x96xf32>
    %272 = math.exp %271 : vector<8x96xf32>
    %cst_113 = arith.constant 1.000000e+00 : f32
    %273 = vector.broadcast %cst_113 : f32 to vector<8x96xf32>
    %274 = arith.addf %273, %272 : vector<8x96xf32>
    %275 = arith.divf %273, %274 : vector<8x96xf32>
    %276 = vector.extract_strided_slice %269 {offsets = [0, 96], sizes = [8, 32], strides = [1, 1]} : vector<8x128xf32> to vector<8x32xf32>
    %277 = math.tanh %276 : vector<8x32xf32>
    %278 = vector.extract_strided_slice %275 {offsets = [0, 0], sizes = [8, 32], strides = [1, 1]} : vector<8x96xf32> to vector<8x32xf32>
    %279 = vector.extract_strided_slice %275 {offsets = [0, 32], sizes = [8, 32], strides = [1, 1]} : vector<8x96xf32> to vector<8x32xf32>
    %280 = vector.extract_strided_slice %275 {offsets = [0, 64], sizes = [8, 32], strides = [1, 1]} : vector<8x96xf32> to vector<8x32xf32>
    %281 = arith.mulf %279, %233 : vector<8x32xf32>
    %282 = arith.mulf %278, %277 : vector<8x32xf32>
    %283 = arith.addf %281, %282 : vector<8x32xf32>
    %284 = math.tanh %283 : vector<8x32xf32>
    %285 = arith.mulf %280, %284 : vector<8x32xf32>
    %c1_114 = arith.constant 1 : index
    %c0_115 = arith.constant 0 : index
    %c0_116 = arith.constant 0 : index
    %286 = vector.load %arg3[%c1_114, %c0_115, %c0_116] : memref<2x32x128xf32, #tpu.memory_space<vmem>>, vector<1x32x128xf32>
    %287 = vector.shape_cast %286 : vector<1x32x128xf32> to vector<32x128xf32>
    %cst_117 = arith.constant dense<0.000000e+00> : vector<8x128xf32>
    %288 = tpu.matmul %262, %287, %cst_117 {dimension_numbers = #tpu.dot_dimension_numbers<[1], [0], [0], [1], [0, 0, 1, 1], [], []>} : vector<8x32xf32>, vector<32x128xf32>, vector<8x128xf32> -> vector<8x128xf32>
    %c1_118 = arith.constant 1 : index
    %c0_119 = arith.constant 0 : index
    %c0_120 = arith.constant 0 : index
    %289 = vector.load %arg4[%c1_118, %c0_119, %c0_120] : memref<2x1x128xf32, #tpu.memory_space<vmem>>, vector<1x1x128xf32>
    %290 = vector.shape_cast %289 : vector<1x1x128xf32> to vector<1x128xf32>
    %291 = vector.broadcast %290 : vector<1x128xf32> to vector<8x128xf32>
    %292 = arith.addf %288, %291 : vector<8x128xf32>
    %c1_121 = arith.constant 1 : index
    %c0_122 = arith.constant 0 : index
    %c0_123 = arith.constant 0 : index
    %293 = vector.load %arg2[%c1_121, %c0_122, %c0_123] : memref<2x32x128xf32, #tpu.memory_space<vmem>>, vector<1x32x128xf32>
    %294 = vector.shape_cast %293 : vector<1x32x128xf32> to vector<32x128xf32>
    %cst_124 = arith.constant dense<0.000000e+00> : vector<8x128xf32>
    %295 = tpu.matmul %285, %294, %cst_124 {dimension_numbers = #tpu.dot_dimension_numbers<[1], [0], [0], [1], [0, 0, 1, 1], [], []>} : vector<8x32xf32>, vector<32x128xf32>, vector<8x128xf32> -> vector<8x128xf32>
    %296 = arith.addf %292, %295 : vector<8x128xf32>
    %297 = vector.extract_strided_slice %296 {offsets = [0, 0], sizes = [8, 96], strides = [1, 1]} : vector<8x128xf32> to vector<8x96xf32>
    %298 = arith.negf %297 : vector<8x96xf32>
    %299 = math.exp %298 : vector<8x96xf32>
    %cst_125 = arith.constant 1.000000e+00 : f32
    %300 = vector.broadcast %cst_125 : f32 to vector<8x96xf32>
    %301 = arith.addf %300, %299 : vector<8x96xf32>
    %302 = arith.divf %300, %301 : vector<8x96xf32>
    %303 = vector.extract_strided_slice %296 {offsets = [0, 96], sizes = [8, 32], strides = [1, 1]} : vector<8x128xf32> to vector<8x32xf32>
    %304 = math.tanh %303 : vector<8x32xf32>
    %305 = vector.extract_strided_slice %302 {offsets = [0, 0], sizes = [8, 32], strides = [1, 1]} : vector<8x96xf32> to vector<8x32xf32>
    %306 = vector.extract_strided_slice %302 {offsets = [0, 32], sizes = [8, 32], strides = [1, 1]} : vector<8x96xf32> to vector<8x32xf32>
    %307 = vector.extract_strided_slice %302 {offsets = [0, 64], sizes = [8, 32], strides = [1, 1]} : vector<8x96xf32> to vector<8x32xf32>
    %308 = arith.mulf %306, %260 : vector<8x32xf32>
    %309 = arith.mulf %305, %304 : vector<8x32xf32>
    %310 = arith.addf %308, %309 : vector<8x32xf32>
    %311 = math.tanh %310 : vector<8x32xf32>
    %312 = arith.mulf %307, %311 : vector<8x32xf32>
    %c6_i32 = arith.constant 6 : i32
    %313 = arith.index_cast %c6_i32 : i32 to index
    %c0_126 = arith.constant 0 : index
    %c0_127 = arith.constant 0 : index
    %314 = vector.load %arg8[%313, %c0_126, %c0_127] : memref<8x8x128xf32, #tpu.memory_space<vmem>>, vector<1x8x128xf32>
    %315 = vector.shape_cast %314 : vector<1x8x128xf32> to vector<8x128xf32>
    %c0_128 = arith.constant 0 : index
    %c0_129 = arith.constant 0 : index
    %c0_130 = arith.constant 0 : index
    %316 = vector.load %arg3[%c0_128, %c0_129, %c0_130] : memref<2x32x128xf32, #tpu.memory_space<vmem>>, vector<1x32x128xf32>
    %317 = vector.shape_cast %316 : vector<1x32x128xf32> to vector<32x128xf32>
    %cst_131 = arith.constant dense<0.000000e+00> : vector<8x128xf32>
    %318 = tpu.matmul %285, %317, %cst_131 {dimension_numbers = #tpu.dot_dimension_numbers<[1], [0], [0], [1], [0, 0, 1, 1], [], []>} : vector<8x32xf32>, vector<32x128xf32>, vector<8x128xf32> -> vector<8x128xf32>
    %319 = arith.addf %315, %318 : vector<8x128xf32>
    %320 = vector.extract_strided_slice %319 {offsets = [0, 0], sizes = [8, 96], strides = [1, 1]} : vector<8x128xf32> to vector<8x96xf32>
    %321 = arith.negf %320 : vector<8x96xf32>
    %322 = math.exp %321 : vector<8x96xf32>
    %cst_132 = arith.constant 1.000000e+00 : f32
    %323 = vector.broadcast %cst_132 : f32 to vector<8x96xf32>
    %324 = arith.addf %323, %322 : vector<8x96xf32>
    %325 = arith.divf %323, %324 : vector<8x96xf32>
    %326 = vector.extract_strided_slice %319 {offsets = [0, 96], sizes = [8, 32], strides = [1, 1]} : vector<8x128xf32> to vector<8x32xf32>
    %327 = math.tanh %326 : vector<8x32xf32>
    %328 = vector.extract_strided_slice %325 {offsets = [0, 0], sizes = [8, 32], strides = [1, 1]} : vector<8x96xf32> to vector<8x32xf32>
    %329 = vector.extract_strided_slice %325 {offsets = [0, 32], sizes = [8, 32], strides = [1, 1]} : vector<8x96xf32> to vector<8x32xf32>
    %330 = vector.extract_strided_slice %325 {offsets = [0, 64], sizes = [8, 32], strides = [1, 1]} : vector<8x96xf32> to vector<8x32xf32>
    %331 = arith.mulf %329, %283 : vector<8x32xf32>
    %332 = arith.mulf %328, %327 : vector<8x32xf32>
    %333 = arith.addf %331, %332 : vector<8x32xf32>
    %334 = math.tanh %333 : vector<8x32xf32>
    %335 = arith.mulf %330, %334 : vector<8x32xf32>
    %c1_133 = arith.constant 1 : index
    %c0_134 = arith.constant 0 : index
    %c0_135 = arith.constant 0 : index
    %336 = vector.load %arg3[%c1_133, %c0_134, %c0_135] : memref<2x32x128xf32, #tpu.memory_space<vmem>>, vector<1x32x128xf32>
    %337 = vector.shape_cast %336 : vector<1x32x128xf32> to vector<32x128xf32>
    %cst_136 = arith.constant dense<0.000000e+00> : vector<8x128xf32>
    %338 = tpu.matmul %312, %337, %cst_136 {dimension_numbers = #tpu.dot_dimension_numbers<[1], [0], [0], [1], [0, 0, 1, 1], [], []>} : vector<8x32xf32>, vector<32x128xf32>, vector<8x128xf32> -> vector<8x128xf32>
    %c1_137 = arith.constant 1 : index
    %c0_138 = arith.constant 0 : index
    %c0_139 = arith.constant 0 : index
    %339 = vector.load %arg4[%c1_137, %c0_138, %c0_139] : memref<2x1x128xf32, #tpu.memory_space<vmem>>, vector<1x1x128xf32>
    %340 = vector.shape_cast %339 : vector<1x1x128xf32> to vector<1x128xf32>
    %341 = vector.broadcast %340 : vector<1x128xf32> to vector<8x128xf32>
    %342 = arith.addf %338, %341 : vector<8x128xf32>
    %c1_140 = arith.constant 1 : index
    %c0_141 = arith.constant 0 : index
    %c0_142 = arith.constant 0 : index
    %343 = vector.load %arg2[%c1_140, %c0_141, %c0_142] : memref<2x32x128xf32, #tpu.memory_space<vmem>>, vector<1x32x128xf32>
    %344 = vector.shape_cast %343 : vector<1x32x128xf32> to vector<32x128xf32>
    %cst_143 = arith.constant dense<0.000000e+00> : vector<8x128xf32>
    %345 = tpu.matmul %335, %344, %cst_143 {dimension_numbers = #tpu.dot_dimension_numbers<[1], [0], [0], [1], [0, 0, 1, 1], [], []>} : vector<8x32xf32>, vector<32x128xf32>, vector<8x128xf32> -> vector<8x128xf32>
    %346 = arith.addf %342, %345 : vector<8x128xf32>
    %347 = vector.extract_strided_slice %346 {offsets = [0, 0], sizes = [8, 96], strides = [1, 1]} : vector<8x128xf32> to vector<8x96xf32>
    %348 = arith.negf %347 : vector<8x96xf32>
    %349 = math.exp %348 : vector<8x96xf32>
    %cst_144 = arith.constant 1.000000e+00 : f32
    %350 = vector.broadcast %cst_144 : f32 to vector<8x96xf32>
    %351 = arith.addf %350, %349 : vector<8x96xf32>
    %352 = arith.divf %350, %351 : vector<8x96xf32>
    %353 = vector.extract_strided_slice %346 {offsets = [0, 96], sizes = [8, 32], strides = [1, 1]} : vector<8x128xf32> to vector<8x32xf32>
    %354 = math.tanh %353 : vector<8x32xf32>
    %355 = vector.extract_strided_slice %352 {offsets = [0, 0], sizes = [8, 32], strides = [1, 1]} : vector<8x96xf32> to vector<8x32xf32>
    %356 = vector.extract_strided_slice %352 {offsets = [0, 32], sizes = [8, 32], strides = [1, 1]} : vector<8x96xf32> to vector<8x32xf32>
    %357 = vector.extract_strided_slice %352 {offsets = [0, 64], sizes = [8, 32], strides = [1, 1]} : vector<8x96xf32> to vector<8x32xf32>
    %358 = arith.mulf %356, %310 : vector<8x32xf32>
    %359 = arith.mulf %355, %354 : vector<8x32xf32>
    %360 = arith.addf %358, %359 : vector<8x32xf32>
    %361 = math.tanh %360 : vector<8x32xf32>
    %362 = arith.mulf %357, %361 : vector<8x32xf32>
    %c7_i32 = arith.constant 7 : i32
    %363 = arith.index_cast %c7_i32 : i32 to index
    %c0_145 = arith.constant 0 : index
    %c0_146 = arith.constant 0 : index
    %364 = vector.load %arg8[%363, %c0_145, %c0_146] : memref<8x8x128xf32, #tpu.memory_space<vmem>>, vector<1x8x128xf32>
    %365 = vector.shape_cast %364 : vector<1x8x128xf32> to vector<8x128xf32>
    %c0_147 = arith.constant 0 : index
    %c0_148 = arith.constant 0 : index
    %c0_149 = arith.constant 0 : index
    %366 = vector.load %arg3[%c0_147, %c0_148, %c0_149] : memref<2x32x128xf32, #tpu.memory_space<vmem>>, vector<1x32x128xf32>
    %367 = vector.shape_cast %366 : vector<1x32x128xf32> to vector<32x128xf32>
    %cst_150 = arith.constant dense<0.000000e+00> : vector<8x128xf32>
    %368 = tpu.matmul %335, %367, %cst_150 {dimension_numbers = #tpu.dot_dimension_numbers<[1], [0], [0], [1], [0, 0, 1, 1], [], []>} : vector<8x32xf32>, vector<32x128xf32>, vector<8x128xf32> -> vector<8x128xf32>
    %369 = arith.addf %365, %368 : vector<8x128xf32>
    %370 = vector.extract_strided_slice %369 {offsets = [0, 0], sizes = [8, 96], strides = [1, 1]} : vector<8x128xf32> to vector<8x96xf32>
    %371 = arith.negf %370 : vector<8x96xf32>
    %372 = math.exp %371 : vector<8x96xf32>
    %cst_151 = arith.constant 1.000000e+00 : f32
    %373 = vector.broadcast %cst_151 : f32 to vector<8x96xf32>
    %374 = arith.addf %373, %372 : vector<8x96xf32>
    %375 = arith.divf %373, %374 : vector<8x96xf32>
    %376 = vector.extract_strided_slice %369 {offsets = [0, 96], sizes = [8, 32], strides = [1, 1]} : vector<8x128xf32> to vector<8x32xf32>
    %377 = math.tanh %376 : vector<8x32xf32>
    %378 = vector.extract_strided_slice %375 {offsets = [0, 0], sizes = [8, 32], strides = [1, 1]} : vector<8x96xf32> to vector<8x32xf32>
    %379 = vector.extract_strided_slice %375 {offsets = [0, 32], sizes = [8, 32], strides = [1, 1]} : vector<8x96xf32> to vector<8x32xf32>
    %380 = vector.extract_strided_slice %375 {offsets = [0, 64], sizes = [8, 32], strides = [1, 1]} : vector<8x96xf32> to vector<8x32xf32>
    %381 = arith.mulf %379, %333 : vector<8x32xf32>
    %382 = arith.mulf %378, %377 : vector<8x32xf32>
    %383 = arith.addf %381, %382 : vector<8x32xf32>
    %384 = math.tanh %383 : vector<8x32xf32>
    %385 = arith.mulf %380, %384 : vector<8x32xf32>
    %c1_152 = arith.constant 1 : index
    %c0_153 = arith.constant 0 : index
    %c0_154 = arith.constant 0 : index
    %386 = vector.load %arg3[%c1_152, %c0_153, %c0_154] : memref<2x32x128xf32, #tpu.memory_space<vmem>>, vector<1x32x128xf32>
    %387 = vector.shape_cast %386 : vector<1x32x128xf32> to vector<32x128xf32>
    %cst_155 = arith.constant dense<0.000000e+00> : vector<8x128xf32>
    %388 = tpu.matmul %362, %387, %cst_155 {dimension_numbers = #tpu.dot_dimension_numbers<[1], [0], [0], [1], [0, 0, 1, 1], [], []>} : vector<8x32xf32>, vector<32x128xf32>, vector<8x128xf32> -> vector<8x128xf32>
    %c1_156 = arith.constant 1 : index
    %c0_157 = arith.constant 0 : index
    %c0_158 = arith.constant 0 : index
    %389 = vector.load %arg4[%c1_156, %c0_157, %c0_158] : memref<2x1x128xf32, #tpu.memory_space<vmem>>, vector<1x1x128xf32>
    %390 = vector.shape_cast %389 : vector<1x1x128xf32> to vector<1x128xf32>
    %391 = vector.broadcast %390 : vector<1x128xf32> to vector<8x128xf32>
    %392 = arith.addf %388, %391 : vector<8x128xf32>
    %c1_159 = arith.constant 1 : index
    %c0_160 = arith.constant 0 : index
    %c0_161 = arith.constant 0 : index
    %393 = vector.load %arg2[%c1_159, %c0_160, %c0_161] : memref<2x32x128xf32, #tpu.memory_space<vmem>>, vector<1x32x128xf32>
    %394 = vector.shape_cast %393 : vector<1x32x128xf32> to vector<32x128xf32>
    %cst_162 = arith.constant dense<0.000000e+00> : vector<8x128xf32>
    %395 = tpu.matmul %385, %394, %cst_162 {dimension_numbers = #tpu.dot_dimension_numbers<[1], [0], [0], [1], [0, 0, 1, 1], [], []>} : vector<8x32xf32>, vector<32x128xf32>, vector<8x128xf32> -> vector<8x128xf32>
    %396 = arith.addf %392, %395 : vector<8x128xf32>
    %397 = vector.extract_strided_slice %396 {offsets = [0, 0], sizes = [8, 96], strides = [1, 1]} : vector<8x128xf32> to vector<8x96xf32>
    %398 = arith.negf %397 : vector<8x96xf32>
    %399 = math.exp %398 : vector<8x96xf32>
    %cst_163 = arith.constant 1.000000e+00 : f32
    %400 = vector.broadcast %cst_163 : f32 to vector<8x96xf32>
    %401 = arith.addf %400, %399 : vector<8x96xf32>
    %402 = arith.divf %400, %401 : vector<8x96xf32>
    %403 = vector.extract_strided_slice %396 {offsets = [0, 96], sizes = [8, 32], strides = [1, 1]} : vector<8x128xf32> to vector<8x32xf32>
    %404 = math.tanh %403 : vector<8x32xf32>
    %405 = vector.extract_strided_slice %402 {offsets = [0, 0], sizes = [8, 32], strides = [1, 1]} : vector<8x96xf32> to vector<8x32xf32>
    %406 = vector.extract_strided_slice %402 {offsets = [0, 32], sizes = [8, 32], strides = [1, 1]} : vector<8x96xf32> to vector<8x32xf32>
    %407 = vector.extract_strided_slice %402 {offsets = [0, 64], sizes = [8, 32], strides = [1, 1]} : vector<8x96xf32> to vector<8x32xf32>
    %408 = arith.mulf %406, %360 : vector<8x32xf32>
    %409 = arith.mulf %405, %404 : vector<8x32xf32>
    %410 = arith.addf %408, %409 : vector<8x32xf32>
    %411 = math.tanh %410 : vector<8x32xf32>
    %412 = arith.mulf %407, %411 : vector<8x32xf32>
    %c8_i32 = arith.constant 8 : i32
    %cst_164 = arith.constant dense<0.000000e+00> : vector<8xf32>
    %413 = vector.multi_reduction <add>, %385, %cst_164 [1] : vector<8x32xf32> to vector<8xf32>
    %414 = vector.shape_cast %413 : vector<8xf32> to vector<8x1xf32>
    %cst_165 = arith.constant 3.200000e+01 : f32
    %415 = vector.broadcast %cst_165 : f32 to vector<8x1xf32>
    %416 = arith.divf %414, %415 : vector<8x1xf32>
    %417 = vector.broadcast %416 : vector<8x1xf32> to vector<8x32xf32>
    %418 = arith.subf %385, %417 : vector<8x32xf32>
    %419 = arith.mulf %418, %418 : vector<8x32xf32>
    %cst_166 = arith.constant dense<0.000000e+00> : vector<8xf32>
    %420 = vector.multi_reduction <add>, %419, %cst_166 [1] : vector<8x32xf32> to vector<8xf32>
    %421 = vector.shape_cast %420 : vector<8xf32> to vector<8x1xf32>
    %cst_167 = arith.constant 3.200000e+01 : f32
    %422 = vector.broadcast %cst_167 : f32 to vector<8x1xf32>
    %423 = arith.divf %421, %422 : vector<8x1xf32>
    %424 = vector.broadcast %416 : vector<8x1xf32> to vector<8x32xf32>
    %425 = arith.subf %385, %424 : vector<8x32xf32>
    %cst_168 = arith.constant 9.99999974E-6 : f32
    %426 = vector.broadcast %cst_168 : f32 to vector<8x1xf32>
    %427 = arith.addf %423, %426 : vector<8x1xf32>
    %428 = math.rsqrt %427 : vector<8x1xf32>
    %429 = vector.broadcast %428 : vector<8x1xf32> to vector<8x32xf32>
    %430 = arith.mulf %425, %429 : vector<8x32xf32>
    %c0_169 = arith.constant 0 : index
    %c0_170 = arith.constant 0 : index
    %431 = vector.load %arg5[%c0_169, %c0_170] : memref<1x32xf32, #tpu.memory_space<vmem>>, vector<1x32xf32>
    %432 = vector.broadcast %431 : vector<1x32xf32> to vector<8x32xf32>
    %433 = arith.mulf %430, %432 : vector<8x32xf32>
    %c0_171 = arith.constant 0 : index
    %c0_172 = arith.constant 0 : index
    %434 = vector.load %arg6[%c0_171, %c0_172] : memref<1x32xf32, #tpu.memory_space<vmem>>, vector<1x32xf32>
    %435 = vector.broadcast %434 : vector<1x32xf32> to vector<8x32xf32>
    %436 = arith.addf %433, %435 : vector<8x32xf32>
    %cst_173 = arith.constant dense<0.000000e+00> : vector<8xf32>
    %437 = vector.multi_reduction <add>, %412, %cst_173 [1] : vector<8x32xf32> to vector<8xf32>
    %438 = vector.shape_cast %437 : vector<8xf32> to vector<8x1xf32>
    %cst_174 = arith.constant 3.200000e+01 : f32
    %439 = vector.broadcast %cst_174 : f32 to vector<8x1xf32>
    %440 = arith.divf %438, %439 : vector<8x1xf32>
    %441 = vector.broadcast %440 : vector<8x1xf32> to vector<8x32xf32>
    %442 = arith.subf %412, %441 : vector<8x32xf32>
    %443 = arith.mulf %442, %442 : vector<8x32xf32>
    %cst_175 = arith.constant dense<0.000000e+00> : vector<8xf32>
    %444 = vector.multi_reduction <add>, %443, %cst_175 [1] : vector<8x32xf32> to vector<8xf32>
    %445 = vector.shape_cast %444 : vector<8xf32> to vector<8x1xf32>
    %cst_176 = arith.constant 3.200000e+01 : f32
    %446 = vector.broadcast %cst_176 : f32 to vector<8x1xf32>
    %447 = arith.divf %445, %446 : vector<8x1xf32>
    %448 = vector.broadcast %440 : vector<8x1xf32> to vector<8x32xf32>
    %449 = arith.subf %412, %448 : vector<8x32xf32>
    %cst_177 = arith.constant 9.99999974E-6 : f32
    %450 = vector.broadcast %cst_177 : f32 to vector<8x1xf32>
    %451 = arith.addf %447, %450 : vector<8x1xf32>
    %452 = math.rsqrt %451 : vector<8x1xf32>
    %453 = vector.broadcast %452 : vector<8x1xf32> to vector<8x32xf32>
    %454 = arith.mulf %449, %453 : vector<8x32xf32>
    %c0_178 = arith.constant 0 : index
    %c0_179 = arith.constant 0 : index
    %455 = vector.load %arg5[%c0_178, %c0_179] : memref<1x32xf32, #tpu.memory_space<vmem>>, vector<1x32xf32>
    %456 = vector.broadcast %455 : vector<1x32xf32> to vector<8x32xf32>
    %457 = arith.mulf %454, %456 : vector<8x32xf32>
    %c0_180 = arith.constant 0 : index
    %c0_181 = arith.constant 0 : index
    %458 = vector.load %arg6[%c0_180, %c0_181] : memref<1x32xf32, #tpu.memory_space<vmem>>, vector<1x32xf32>
    %459 = vector.broadcast %458 : vector<1x32xf32> to vector<8x32xf32>
    %460 = arith.addf %457, %459 : vector<8x32xf32>
    %cst_182 = arith.constant dense<0.000000e+00> : vector<8xf32>
    %461 = vector.multi_reduction <add>, %383, %cst_182 [1] : vector<8x32xf32> to vector<8xf32>
    %462 = vector.shape_cast %461 : vector<8xf32> to vector<8x1xf32>
    %cst_183 = arith.constant 3.200000e+01 : f32
    %463 = vector.broadcast %cst_183 : f32 to vector<8x1xf32>
    %464 = arith.divf %462, %463 : vector<8x1xf32>
    %465 = vector.broadcast %464 : vector<8x1xf32> to vector<8x32xf32>
    %466 = arith.subf %383, %465 : vector<8x32xf32>
    %467 = arith.mulf %466, %466 : vector<8x32xf32>
    %cst_184 = arith.constant dense<0.000000e+00> : vector<8xf32>
    %468 = vector.multi_reduction <add>, %467, %cst_184 [1] : vector<8x32xf32> to vector<8xf32>
    %469 = vector.shape_cast %468 : vector<8xf32> to vector<8x1xf32>
    %cst_185 = arith.constant 3.200000e+01 : f32
    %470 = vector.broadcast %cst_185 : f32 to vector<8x1xf32>
    %471 = arith.divf %469, %470 : vector<8x1xf32>
    %472 = vector.broadcast %464 : vector<8x1xf32> to vector<8x32xf32>
    %473 = arith.subf %383, %472 : vector<8x32xf32>
    %cst_186 = arith.constant 9.99999974E-6 : f32
    %474 = vector.broadcast %cst_186 : f32 to vector<8x1xf32>
    %475 = arith.addf %471, %474 : vector<8x1xf32>
    %476 = math.rsqrt %475 : vector<8x1xf32>
    %477 = vector.broadcast %476 : vector<8x1xf32> to vector<8x32xf32>
    %478 = arith.mulf %473, %477 : vector<8x32xf32>
    %c0_187 = arith.constant 0 : index
    %c0_188 = arith.constant 0 : index
    %479 = vector.load %arg5[%c0_187, %c0_188] : memref<1x32xf32, #tpu.memory_space<vmem>>, vector<1x32xf32>
    %480 = vector.broadcast %479 : vector<1x32xf32> to vector<8x32xf32>
    %481 = arith.mulf %478, %480 : vector<8x32xf32>
    %c0_189 = arith.constant 0 : index
    %c0_190 = arith.constant 0 : index
    %482 = vector.load %arg6[%c0_189, %c0_190] : memref<1x32xf32, #tpu.memory_space<vmem>>, vector<1x32xf32>
    %483 = vector.broadcast %482 : vector<1x32xf32> to vector<8x32xf32>
    %484 = arith.addf %481, %483 : vector<8x32xf32>
    %cst_191 = arith.constant dense<0.000000e+00> : vector<8xf32>
    %485 = vector.multi_reduction <add>, %410, %cst_191 [1] : vector<8x32xf32> to vector<8xf32>
    %486 = vector.shape_cast %485 : vector<8xf32> to vector<8x1xf32>
    %cst_192 = arith.constant 3.200000e+01 : f32
    %487 = vector.broadcast %cst_192 : f32 to vector<8x1xf32>
    %488 = arith.divf %486, %487 : vector<8x1xf32>
    %489 = vector.broadcast %488 : vector<8x1xf32> to vector<8x32xf32>
    %490 = arith.subf %410, %489 : vector<8x32xf32>
    %491 = arith.mulf %490, %490 : vector<8x32xf32>
    %cst_193 = arith.constant dense<0.000000e+00> : vector<8xf32>
    %492 = vector.multi_reduction <add>, %491, %cst_193 [1] : vector<8x32xf32> to vector<8xf32>
    %493 = vector.shape_cast %492 : vector<8xf32> to vector<8x1xf32>
    %cst_194 = arith.constant 3.200000e+01 : f32
    %494 = vector.broadcast %cst_194 : f32 to vector<8x1xf32>
    %495 = arith.divf %493, %494 : vector<8x1xf32>
    %496 = vector.broadcast %488 : vector<8x1xf32> to vector<8x32xf32>
    %497 = arith.subf %410, %496 : vector<8x32xf32>
    %cst_195 = arith.constant 9.99999974E-6 : f32
    %498 = vector.broadcast %cst_195 : f32 to vector<8x1xf32>
    %499 = arith.addf %495, %498 : vector<8x1xf32>
    %500 = math.rsqrt %499 : vector<8x1xf32>
    %501 = vector.broadcast %500 : vector<8x1xf32> to vector<8x32xf32>
    %502 = arith.mulf %497, %501 : vector<8x32xf32>
    %c0_196 = arith.constant 0 : index
    %c0_197 = arith.constant 0 : index
    %503 = vector.load %arg5[%c0_196, %c0_197] : memref<1x32xf32, #tpu.memory_space<vmem>>, vector<1x32xf32>
    %504 = vector.broadcast %503 : vector<1x32xf32> to vector<8x32xf32>
    %505 = arith.mulf %502, %504 : vector<8x32xf32>
    %c0_198 = arith.constant 0 : index
    %c0_199 = arith.constant 0 : index
    %506 = vector.load %arg6[%c0_198, %c0_199] : memref<1x32xf32, #tpu.memory_space<vmem>>, vector<1x32xf32>
    %507 = vector.broadcast %506 : vector<1x32xf32> to vector<8x32xf32>
    %508 = arith.addf %505, %507 : vector<8x32xf32>
    %509 = tpu.concatenate %436, %460, %484, %508 in 1 : vector<8x32xf32>, vector<8x32xf32>, vector<8x32xf32>, vector<8x32xf32> -> vector<8x128xf32>
    %c0_200 = arith.constant 0 : index
    %c0_201 = arith.constant 0 : index
    %510 = vector.load %arg7[%c0_200, %c0_201] : memref<8x128xf32, #tpu.memory_space<vmem>>, vector<8x128xf32>
    tpu.vector_store %arg7[%c0_200, %c0_201], %509 {strides = array<i32>} : memref<8x128xf32, #tpu.memory_space<vmem>>, vector<8x128xf32>,
    return
  }
  func.func @transform_0(%arg0: i32) -> (i32, i32, i32) {
    %c0_i32 = arith.constant 0 : i32
    %c0_i32_0 = arith.constant 0 : i32
    %c0_i32_1 = arith.constant 0 : i32
    %c0_i32_2 = arith.constant 0 : i32
    return %c0_i32, %c0_i32_0, %c0_i32_1 : i32, i32, i32
  }
  func.func @transform_1(%arg0: i32) -> (i32, i32, i32) {
    %c0_i32 = arith.constant 0 : i32
    %c0_i32_0 = arith.constant 0 : i32
    %c0_i32_1 = arith.constant 0 : i32
    %c0_i32_2 = arith.constant 0 : i32
    return %c0_i32, %c0_i32_0, %c0_i32_1 : i32, i32, i32
  }
  func.func @transform_2(%arg0: i32) -> (i32, i32, i32) {
    %c0_i32 = arith.constant 0 : i32
    %c0_i32_0 = arith.constant 0 : i32
    %c0_i32_1 = arith.constant 0 : i32
    %c0_i32_2 = arith.constant 0 : i32
    return %c0_i32, %c0_i32_0, %c0_i32_1 : i32, i32, i32
  }
  func.func @transform_3(%arg0: i32) -> (i32, i32, i32) {
    %c0_i32 = arith.constant 0 : i32
    %c0_i32_0 = arith.constant 0 : i32
    %c0_i32_1 = arith.constant 0 : i32
    %c0_i32_2 = arith.constant 0 : i32
    return %c0_i32, %c0_i32_0, %c0_i32_1 : i32, i32, i32
  }
  func.func @transform_4(%arg0: i32) -> (i32, i32) {
    %c0_i32 = arith.constant 0 : i32
    %c0_i32_0 = arith.constant 0 : i32
    %c0_i32_1 = arith.constant 0 : i32
    return %c0_i32, %c0_i32_0 : i32, i32
  }
  func.func @transform_5(%arg0: i32) -> (i32, i32) {
    %c0_i32 = arith.constant 0 : i32
    %c0_i32_0 = arith.constant 0 : i32
    %c0_i32_1 = arith.constant 0 : i32
    return %c0_i32, %c0_i32_0 : i32, i32
  }
  func.func @transform_6(%arg0: i32) -> (i32, i32) {
    %c0_i32 = arith.constant 0 : i32
    %c0_i32_0 = arith.constant 0 : i32
    %c0_i32_1 = arith.constant 0 : i32
    return %c0_i32, %c0_i32_0 : i32, i32
  }
}

</mosaic_0001>

<bundles_post_ra>
// kernel: tpu_custom_call.1
= control target key start
LH: loop header
LB: loop body
LE: loop exit
PB: predicated region body
PF: predicated region fallthrough
CT: control target
= control target key end

     0   :  { %11 = vsyncpa [#allocation4], 0  ;;  %s2284_s0 = inlined_call_operand.hbm [shape: f32[8,8,32], index: 0, kind: input, shape index: {}]   ;;  %s2285_s1 = inlined_call_operand.hbm [shape: f32[2,32,128], index: 1, kind: input, shape index: {}]   ;;  %s2286_s2 = inlined_call_operand.hbm [shape: f32[2,32,128], index: 2, kind: input, shape index: {}]   ;;  %s2287_s3 = inlined_call_operand.vmem [shape: f32[2,1,128], index: 3, kind: input, shape index: {}]   ;;  %s2288_s4 = inlined_call_operand.vmem [shape: f32[1,32], index: 4, kind: input, shape index: {}]   ;;  %s2289_s5 = inlined_call_operand.vmem [shape: f32[1,32], index: 5, kind: input, shape index: {}]   ;;  %s2290_s6 = inlined_call_operand.hbm [shape: f32[8,128], index: 6, kind: output, shape index: {}]  }
   0x1   :  { %12 = vsyncpa [#allocation7], 0 }
   0x2   :  { %13 = vsyncpa [#allocation5], 0  ;;  %s31_s23 = sshll.u32 %s2285_s1, 4  ;;  %s1857_s24 = smov [#allocation6]   ;;  %s32_s23 = int_to_ptr.hbm [resolvable:$true] %s31_s23 }
   0x3   :  { %s33_s25 = sshll.u32 %s1857_s24, 4  ;;  %s18_s28 = sshll.u32 %s2284_s0, 4  ;;  %s34_s25 = int_to_ptr.vmem [resolvable:$true] %s33_s25  ;;  %s19_s28 = int_to_ptr.hbm [resolvable:$true] %s18_s28 }
   0x4   :  { %s1858_s29 = smov 128   ;;  %s1859_s30 = smov 8  }
   0x5   :  { %39 = dma.hbm_to_vmem [thread:$0]  %s32_s23, 1024, %s34_s25, [#allocation7], %s1858_s29, %s1858_s29, %s1859_s30  }
   0x6   :  { %s1860_s7 = smov [#allocation3]   ;;  %s44_s11 = sshll.u32 %s2286_s2, 4  ;;  %s45_s11 = int_to_ptr.hbm [resolvable:$true] %s44_s11 }
   0x7   :  { %s20_s8 = sshll.u32 %s1860_s7, 4  ;;  %s1861_s1 = smov [#allocation8]   ;;  %s21_s8 = int_to_ptr.vmem [resolvable:$true] %s20_s8 }
   0x8   :  { %26 = dma.hbm_to_vmem [thread:$0]  %s19_s28, 1024, %s21_s8, [#allocation4], %s1858_s29, %s1858_s29, %s1859_s30  }
   0x9   :  { %s46_s12 = sshll.u32 %s1861_s1, 4  ;;  %s47_s12 = int_to_ptr.vmem [resolvable:$true] %s46_s12 }
   0xa   :  { %52 = dma.hbm_to_vmem [thread:$0]  %s45_s11, 1024, %s47_s12, [#allocation7], %s1858_s29, %s1858_s29, %s1859_s30  }
   0xb   :  { %1851 = dma.done.wait [#allocation4], 1024  }
   0xc   :  { %1852 = vsyncadd [#allocation4], 4294966272 }
   0xd   :  { %1853 = dma.done.wait [#allocation7], 2048  }
   0xe   :  { %1854 = vsyncadd [#allocation7], 4294965248  ;;  %v82_v0 = vld [vmem:[#allocation6 + $0x18] sm:$0xff]  ;;  %v81_v1 = vld [vmem:[#allocation6 + $0x10] sm:$0xff]  ;;  %vm87_vm0 = vcmask 261120   ;;  %v1862_v9 = vmov 0.0  }
   0xf   :  { %v1912_v2 = vld [vmem:[#allocation8 + $0x18] sm:$0xff]  ;;  %124 = vmatpush.msra.mxu0 %v82_v0  ;;  %v1915_v3 = vld [vmem:[#allocation8 + $0x10] sm:$0xff]  ;;  %v80_v4 = vld [vmem:[#allocation6 + $0x8] sm:$0xff]  ;;  %s1863_s13 = smov 32   ;;  %s1864_s14 = smov 64  }
  0x10   :  { %181 = vmatpush.msra.mxu1 %v1912_v2  ;;  %v1917_v5 = vld [vmem:[#allocation8 + $0x8] sm:$0xff]  ;;  %v79_v6 = vld [vmem:[#allocation6] sm:$0xff]  ;;  %v1946_v35 = vld [vmem:[#allocation8 + $0x38] sm:$0xff]  ;;  %s1540_s27 = sshll.u32 %s2290_s6, 4  ;;  %s1541_s27 = int_to_ptr.hbm [resolvable:$true] %s1540_s27 }
  0x11   :  { %125 = vmatpush.msra.mxu0 %v81_v1  ;;  %v1920_v7 = vld [vmem:[#allocation8] sm:$0xff]  ;;  %v1948_v36 = vld [vmem:[#allocation8 + $0x30] sm:$0xff]  ;;  %v1950_v37 = vld [vmem:[#allocation6 + $0x38] sm:$0xff]  ;;  %249 = vmatpush.msra.mxu2 %v1946_v35 }
  0x12   :  { %182 = vmatpush.msra.mxu1 %v1915_v3  ;;  %v71_v8 = vld [vmem:[#allocation3] sm:$0xff]  ;;  %279 = vmatpush.msra.mxu3 %v1950_v37  ;;  %v1954_v38 = vld [vmem:[#allocation6 + $0x30] sm:$0xff]  ;;  %v1956_v39 = vld [vmem:[#allocation8 + $0x28] sm:$0xff] }
  0x13   :  { %126 = vmatpush.msra.mxu0 %v80_v4  ;;  %v1937_v10 = vld [vmem:[%s2287_s3] ss:$0 sm:$0xff]  ;;  %v1958_v40 = vld [vmem:[#allocation6 + $0x28] sm:$0xff]  ;;  %250 = vmatpush.msra.mxu2 %v1948_v36  ;;  %v1998_v47 = vld [vmem:[%s2287_s3 + $0x1] ss:$0 sm:$0xff] }
  0x14   :  { %183 = vmatpush.msra.mxu1 %v1917_v5  ;;  %v72_v41 = vld [vmem:[#allocation3 + $0x8] sm:$0xff]  ;;  %280 = vmatpush.msra.mxu3 %v1954_v38  ;;  %v1962_v42 = vld [vmem:[#allocation8 + $0x20] sm:$0xff] }
  0x15   :  { %127 = vmatpush.msra.mxu0 %v79_v6  ;;  %v1965_v43 = vld [vmem:[#allocation6 + $0x20] sm:$0xff]  ;;  %251 = vmatpush.msra.mxu2 %v1956_v39 }
  0x16   :  { %184 = vmatpush.msra.mxu1 %v1920_v7  ;;  %1551 = vmatmul.msk.f32.vlgmr.msra.gmra.mxu0 %vm87_vm0, %v71_v8 }
  0x17   :  { %185 = vmatmul.f32.vlgmr.msra.gmra.mxu1 %v1862_v9  ;;  %281 = vmatpush.msra.mxu3 %v1958_v40 }
  0x18   :  { %339 = vmatpush.msrb.mxu1 %v1912_v2  ;;  %252 = vmatpush.msra.mxu2 %v1962_v42 }
  0x19   :  { %282 = vmatpush.msra.mxu3 %v1965_v43  ;;  %253 = vmatmul.f32.vlgmr.msra.gmra.mxu2 %v1862_v9 }
  0x1a   :  { %340 = vmatpush.msrb.mxu1 %v1915_v3  ;;  %402 = vmatpush.msrb.mxu2 %v1946_v35 }
  0x1b   :  { %427 = vmatpush.msrb.mxu3 %v1950_v37 }
  0x1c   :  { %341 = vmatpush.msrb.mxu1 %v1917_v5  ;;  %403 = vmatpush.msrb.mxu2 %v1948_v36 }
  0x1d   :  { %428 = vmatpush.msrb.mxu3 %v1954_v38 }
  0x1e   :  { %342 = vmatpush.msrb.mxu1 %v1920_v7  ;;  %1552 = vmatmul.msk.f32.gmra.mxu0 %vm87_vm0, %v72_v41 }
  0x1f   :  { %429 = vmatpush.msrb.mxu3 %v1958_v40  ;;  %404 = vmatpush.msrb.mxu2 %v1956_v39 }
  0x20   :  { %487 = vmatpush.msra.mxu1 %v1912_v2 }
  0x21   :  { %430 = vmatpush.msrb.mxu3 %v1965_v43  ;;  %405 = vmatpush.msrb.mxu2 %v1962_v42 }
  0x22   :  { %488 = vmatpush.msra.mxu1 %v1915_v3 }
  0x23   :  { %550 = vmatpush.msra.mxu2 %v1946_v35 }
  0x24   :  { %489 = vmatpush.msra.mxu1 %v1917_v5 }
  0x25   :  { %551 = vmatpush.msra.mxu2 %v1948_v36 }
  0x26   :  { %490 = vmatpush.msra.mxu1 %v1920_v7 }
  0x27   :  { %552 = vmatpush.msra.mxu2 %v1956_v39 }
  0x29   :  { %553 = vmatpush.msra.mxu2 %v1962_v42 }
  0x93   :  { %v129_v11 = vpop.f32.mrf.mxu0 }
  0x94   :  { %v186_v12 = vpop.f32.mrf.mxu1  ;;  %v130_v13 = vadd.f32 %v1937_v10, %v129_v11 }
  0x96   :  { %v189_v14 = vadd.f32 %v186_v12, %v130_v13 }
  0x98   :  { %1613 = vtanh.f32 %v189_v14  ;;  %v1559_v16 = vmul.f32 -1.442695, %v189_v14 }
  0x9a   :  { %1615 = vpow2.f32 %v1559_v16 }
  0x9b   :  { %v132_v50 = vpop.f32.mrf.mxu0 }
  0x9c   :  { %v254_v48 = vpop.f32.mrf.mxu2  ;;  %v133_v53 = vadd.f32 %v1937_v10, %v132_v50 }
  0x9d   :  { %v255_v49 = vadd.f32 %v1998_v47, %v254_v48 }
  0x9e   :  { %v1614_v15 = vpop.eup %1613 }
  0x9f   :  { %212 = vrot.lane.b32.xlu0 %v1614_v15, %s1863_s13 }
  0xa0   :  { %v1616_v17 = vpop.eup %1615 }
  0xa1   :  { %v193_v18 = vadd.f32 1.0, %v1616_v17 }
  0xa3   :  { %1617 = vrcp.f32 %v193_v18  ;;  %v205_v24 = vand.u32 2147483648, %v193_v18  ;;  %vm199_vm2 = vweird.f32 %v193_v18  ;;  %v203_v25 = vand.u32 2147483647, %v193_v18 }
  0xa5   :  { %v206_v27 = vor.u32 1.1754944e-38, %v205_v24  ;;  %vm204_vm4 = vcmp.eq.f32.partialorder %v203_v25, 8.507059e+37 }
  0xa9   :  { %v1618_v19 = vpop.eup %1617 }
  0xaa   :  { %v195_v20 = vmul.f32 %v1618_v19, %v193_v18  ;;  %vm200_vm1 = vweird.f32 %v1618_v19 }
  0xab   :  { %vm201_vm3 = vmor %vm199_vm2, %vm200_vm1 }
  0xac   :  { %v196_v21 = vsub.f32 1.0, %v195_v20 }
  0xae   :  { %v197_v22 = vmul.f32 %v1618_v19, %v196_v21 }
  0xb0   :  { %v198_v23 = vadd.f32 %v1618_v19, %v197_v22 }
  0xb2   :  { %v202_v26 = vsel %vm201_vm3, %v1618_v19, %v198_v23 }
  0xb3   :  { %v207_v29 = vsel %vm204_vm4, %v206_v27, %v202_v26 }
  0xb4   :  { %v210_v31 = vmul.f32 0.0, %v207_v29 }
 0x111   :  { %v213_v28 = vpop.permute.xlu0 %212 }
 0x112   :  { %v215_v30 = vmul.f32 %v213_v28, %v207_v29 }
 0x114   :  { %217 = vrot.lane.b32.xlu0 %v215_v30, %s1863_s13 }
 0x186   :  { %v218_v32 = vpop.permute.xlu0 %217 }
 0x187   :  { %v1942_v33 = vadd.f32 %v218_v32, %v210_v31 }
 0x189   :  { %1619 = vtanh.f32 %v1942_v33 }
 0x18f   :  { %v1620_v34 = vpop.eup %1619 }
 0x190   :  { %223 = vrot.lane.b32.xlu1 %v1620_v34, %s1863_s13 }
 0x202   :  { %v224_v44 = vpop.permute.xlu1 %223 }
 0x203   :  { %v226_v45 = vmul.f32 %v224_v44, %v207_v29 }
 0x205   :  { %263 = vrot.lane.b32.xlu1 %v226_v45, %s1864_s14 }
 0x277   :  { %v264_v46 = vpop.permute.xlu1 %263 }
 0x278   :  { %1561 = vmatmul.msk.f32.vlgmr.msra.gmra.mxu3 %vm87_vm0, %v264_v46  ;;  %1563 = vmatmul.msk.f32.vlgmr.msrb.gmra.mxu1 %vm87_vm0, %v264_v46 }
 0x279   :  { %635 = vmatpush.msrb.mxu1 %v1912_v2  ;;  %575 = vmatpush.msra.mxu3 %v1950_v37 }
 0x27b   :  { %636 = vmatpush.msrb.mxu1 %v1915_v3  ;;  %576 = vmatpush.msra.mxu3 %v1954_v38 }
 0x27d   :  { %637 = vmatpush.msrb.mxu1 %v1917_v5  ;;  %577 = vmatpush.msra.mxu3 %v1958_v40 }
 0x27f   :  { %638 = vmatpush.msrb.mxu1 %v1920_v7  ;;  %578 = vmatpush.msra.mxu3 %v1965_v43 }
 0x2f5   :  { %v344_v54 = vpop.f32.mrf.mxu1 }
 0x2f6   :  { %v347_v55 = vadd.f32 %v344_v54, %v133_v53 }
 0x2f8   :  { %v1564_v59 = vmul.f32 -1.442695, %v347_v55 }
 0x2fb   :  { %v284_v51 = vpop.f32.mrf.mxu3 }
 0x2fc   :  { %v287_v52 = vadd.f32 %v284_v51, %v255_v49 }
 0x2fe   :  { %1621 = vtanh.f32 %v287_v52  ;;  %v1562_v58 = vmul.f32 -1.442695, %v287_v52 }
 0x2ff   :  { %1623 = vtanh.f32 %v347_v55 }
 0x300   :  { %1625 = vpow2.f32 %v1562_v58 }
 0x301   :  { %1627 = vpow2.f32 %v1564_v59 }
 0x304   :  { %v1622_v56 = vpop.eup %1621 }
 0x305   :  { %310 = vrot.lane.b32.xlu2 %v1622_v56, %s1863_s13  ;;  %v1624_v57 = vpop.eup %1623 }
 0x306   :  { %v1626_v60 = vpop.eup %1625 }
 0x307   :  { %v291_v61 = vadd.f32 1.0, %v1626_v60  ;;  %v1628_v62 = vpop.eup %1627 }
 0x308   :  { %v351_v63 = vadd.f32 1.0, %v1628_v62 }
 0x309   :  { %1629 = vrcp.f32 %v291_v61  ;;  %v303_v13 = vand.u32 2147483648, %v291_v61  ;;  %vm297_vm6 = vweird.f32 %v291_v61  ;;  %v301_v14 = vand.u32 2147483647, %v291_v61 }
 0x30a   :  { %1631 = vrcp.f32 %v351_v63  ;;  %v363_v22 = vand.u32 2147483648, %v351_v63  ;;  %vm357_vm10 = vweird.f32 %v351_v63  ;;  %v361_v23 = vand.u32 2147483647, %v351_v63 }
 0x30b   :  { %v304_v17 = vor.u32 1.1754944e-38, %v303_v13  ;;  %vm302_vm8 = vcmp.eq.f32.partialorder %v301_v14, 8.507059e+37 }
 0x30c   :  { %v364_v25 = vor.u32 1.1754944e-38, %v363_v22  ;;  %vm362_vm12 = vcmp.eq.f32.partialorder %v361_v23, 8.507059e+37 }
 0x30d   :  { %370 = vrot.lane.b32.xlu2 %v1624_v57, %s1863_s13 }
 0x30f   :  { %v1630_v0 = vpop.eup %1629 }
 0x310   :  { %v293_v1 = vmul.f32 %v1630_v0, %v291_v61  ;;  %v1632_v6 = vpop.eup %1631  ;;  %vm298_vm5 = vweird.f32 %v1630_v0 }
 0x311   :  { %v353_v9 = vmul.f32 %v1632_v6, %v351_v63  ;;  %vm299_vm7 = vmor %vm297_vm6, %vm298_vm5  ;;  %vm358_vm9 = vweird.f32 %v1632_v6 }
 0x312   :  { %v294_v4 = vsub.f32 1.0, %v293_v1  ;;  %vm359_vm11 = vmor %vm357_vm10, %vm358_vm9 }
 0x313   :  { %v354_v12 = vsub.f32 1.0, %v353_v9 }
 0x314   :  { %v295_v8 = vmul.f32 %v1630_v0, %v294_v4 }
 0x315   :  { %v355_v16 = vmul.f32 %v1632_v6, %v354_v12 }
 0x316   :  { %v296_v11 = vadd.f32 %v1630_v0, %v295_v8 }
 0x317   :  { %v356_v21 = vadd.f32 %v1632_v6, %v355_v16 }
 0x318   :  { %v300_v15 = vsel %vm299_vm7, %v1630_v0, %v296_v11 }
 0x319   :  { %v305_v19 = vsel %vm302_vm8, %v304_v17, %v300_v15  ;;  %v360_v24 = vsel %vm359_vm11, %v1632_v6, %v356_v21 }
 0x31a   :  { %v365_v26 = vsel %vm362_vm12, %v364_v25, %v360_v24  ;;  %v308_v29 = vmul.f32 0.0, %v305_v19 }
 0x31b   :  { %v368_v32 = vmul.f32 %v365_v26, %v1942_v33  ;;  %v73_v33 = vld [vmem:[#allocation3 + $0x10] sm:$0xff] }
 0x31c   :  { %1553 = vmatmul.msk.f32.gmra.mxu0 %vm87_vm0, %v73_v33 }
 0x35f   :  { %v311_v18 = vpop.permute.xlu2 %310 }
 0x360   :  { %v313_v20 = vmul.f32 %v311_v18, %v305_v19 }
 0x362   :  { %315 = vrot.lane.b32.xlu0 %v313_v20, %s1863_s13 }
 0x367   :  { %v371_v27 = vpop.permute.xlu2 %370 }
 0x368   :  { %v373_v28 = vmul.f32 %v371_v27, %v365_v26 }
 0x36a   :  { %375 = vrot.lane.b32.xlu1 %v373_v28, %s1863_s13 }
 0x399   :  { %v135_v53 = vpop.f32.mrf.mxu0 }
 0x39a   :  { %v136_v54 = vadd.f32 %v1937_v10, %v135_v53  ;;  %v74_v53 = vld [vmem:[#allocation3 + $0x18] sm:$0xff] }
 0x39b   :  { %1554 = vmatmul.msk.f32.gmra.mxu0 %vm87_vm0, %v74_v53 }
 0x3d4   :  { %v316_v30 = vpop.permute.xlu0 %315 }
 0x3d5   :  { %v2006_v31 = vadd.f32 %v316_v30, %v308_v29 }
 0x3d7   :  { %1633 = vtanh.f32 %v2006_v31 }
 0x3dc   :  { %v376_v34 = vpop.permute.xlu1 %375 }
 0x3dd   :  { %v1634_v41 = vpop.eup %1633  ;;  %v2010_v44 = vadd.f32 %v376_v34, %v368_v32 }
 0x3de   :  { %321 = vrot.lane.b32.xlu2 %v1634_v41, %s1863_s13 }
 0x3df   :  { %1635 = vtanh.f32 %v2010_v44 }
 0x3e5   :  { %v1636_v45 = vpop.eup %1635 }
 0x3e6   :  { %381 = vrot.lane.b32.xlu0 %v1636_v45, %s1863_s13 }
 0x438   :  { %v322_v46 = vpop.permute.xlu2 %321 }
 0x439   :  { %v324_v48 = vmul.f32 %v322_v46, %v305_v19 }
 0x43b   :  { %386 = vrot.lane.b32.xlu1 %v324_v48, %s1864_s14 }
 0x458   :  { %v382_v49 = vpop.permute.xlu0 %381 }
 0x459   :  { %v384_v50 = vmul.f32 %v382_v49, %v365_v26 }
 0x45b   :  { %411 = vrot.lane.b32.xlu2 %v384_v50, %s1864_s14 }
 0x4ad   :  { %v387_v51 = vpop.permute.xlu1 %386 }
 0x4ae   :  { %1565 = vmatmul.msk.f32.vlgmr.msrb.gmra.mxu2 %vm87_vm0, %v387_v51 }
 0x4af   :  { %698 = vmatpush.msrb.mxu2 %v1946_v35 }
 0x4b1   :  { %699 = vmatpush.msrb.mxu2 %v1948_v36 }
 0x4b3   :  { %700 = vmatpush.msrb.mxu2 %v1956_v39 }
 0x4b5   :  { %v412_v52 = vpop.permute.xlu2 %411  ;;  %701 = vmatpush.msrb.mxu2 %v1962_v42 }
 0x4b6   :  { %1566 = vmatmul.msk.f32.vlgmr.msrb.gmra.mxu3 %vm87_vm0, %v412_v52  ;;  %1568 = vmatmul.msk.f32.vlgmr.msra.gmra.mxu1 %vm87_vm0, %v412_v52 }
 0x4b7   :  { %723 = vmatpush.msrb.mxu3 %v1950_v37  ;;  %783 = vmatpush.msra.mxu1 %v1912_v2 }
 0x4b9   :  { %724 = vmatpush.msrb.mxu3 %v1954_v38  ;;  %784 = vmatpush.msra.mxu1 %v1915_v3 }
 0x4bb   :  { %725 = vmatpush.msrb.mxu3 %v1958_v40  ;;  %785 = vmatpush.msra.mxu1 %v1917_v5 }
 0x4bd   :  { %726 = vmatpush.msrb.mxu3 %v1965_v43  ;;  %786 = vmatpush.msra.mxu1 %v1920_v7 }
 0x531   :  { %v407_v57 = vpop.f32.mrf.mxu2 }
 0x532   :  { %v408_v58 = vadd.f32 %v1998_v47, %v407_v57 }
 0x533   :  { %v492_v55 = vpop.f32.mrf.mxu1 }
 0x534   :  { %v495_v56 = vadd.f32 %v492_v55, %v136_v54 }
 0x536   :  { %1637 = vtanh.f32 %v495_v56  ;;  %v1569_v63 = vmul.f32 -1.442695, %v495_v56 }
 0x539   :  { %v432_v59 = vpop.f32.mrf.mxu3 }
 0x53a   :  { %v435_v60 = vadd.f32 %v432_v59, %v408_v58  ;;  %v138_v58 = vpop.f32.mrf.mxu0 }
 0x53b   :  { %v139_v59 = vadd.f32 %v1937_v10, %v138_v58 }
 0x53c   :  { %v1638_v61 = vpop.eup %1637  ;;  %1639 = vtanh.f32 %v435_v60  ;;  %v1567_v0 = vmul.f32 -1.442695, %v435_v60 }
 0x53d   :  { %518 = vrot.lane.b32.xlu1 %v1638_v61, %s1863_s13  ;;  %1641 = vpow2.f32 %v1569_v63 }
 0x53e   :  { %1643 = vpow2.f32 %v1567_v0 }
 0x542   :  { %v1640_v62 = vpop.eup %1639 }
 0x543   :  { %458 = vrot.lane.b32.xlu0 %v1640_v62, %s1863_s13  ;;  %v1642_v1 = vpop.eup %1641 }
 0x544   :  { %v499_v4 = vadd.f32 1.0, %v1642_v1  ;;  %v1644_v6 = vpop.eup %1643 }
 0x545   :  { %v439_v8 = vadd.f32 1.0, %v1644_v6 }
 0x546   :  { %1645 = vrcp.f32 %v499_v4  ;;  %v511_v18 = vand.u32 2147483648, %v499_v4  ;;  %vm505_vm14 = vweird.f32 %v499_v4  ;;  %v509_v19 = vand.u32 2147483647, %v499_v4 }
 0x547   :  { %1647 = vrcp.f32 %v439_v8  ;;  %v451_v26 = vand.u32 2147483648, %v439_v8  ;;  %vm445_vm3 = vweird.f32 %v439_v8  ;;  %v449_v28 = vand.u32 2147483647, %v439_v8 }
 0x548   :  { %v512_v22 = vor.u32 1.1754944e-38, %v511_v18  ;;  %vm510_vm1 = vcmp.eq.f32.partialorder %v509_v19, 8.507059e+37 }
 0x549   :  { %v452_v30 = vor.u32 1.1754944e-38, %v451_v26  ;;  %vm450_vm5 = vcmp.eq.f32.partialorder %v449_v28, 8.507059e+37 }
 0x54c   :  { %v1646_v9 = vpop.eup %1645 }
 0x54d   :  { %v501_v11 = vmul.f32 %v1646_v9, %v499_v4  ;;  %v1648_v12 = vpop.eup %1647  ;;  %vm506_vm13 = vweird.f32 %v1646_v9 }
 0x54e   :  { %v441_v14 = vmul.f32 %v1648_v12, %v439_v8  ;;  %vm507_vm15 = vmor %vm505_vm14, %vm506_vm13  ;;  %vm446_vm2 = vweird.f32 %v1648_v12 }
 0x54f   :  { %v502_v13 = vsub.f32 1.0, %v501_v11  ;;  %vm447_vm4 = vmor %vm445_vm3, %vm446_vm2 }
 0x550   :  { %v442_v16 = vsub.f32 1.0, %v441_v14 }
 0x551   :  { %v503_v15 = vmul.f32 %v1646_v9, %v502_v13 }
 0x552   :  { %v443_v20 = vmul.f32 %v1648_v12, %v442_v16 }
 0x553   :  { %v504_v17 = vadd.f32 %v1646_v9, %v503_v15 }
 0x554   :  { %v444_v23 = vadd.f32 %v1648_v12, %v443_v20 }
 0x555   :  { %v508_v21 = vsel %vm507_vm15, %v1646_v9, %v504_v17 }
 0x556   :  { %v513_v25 = vsel %vm510_vm1, %v512_v22, %v508_v21  ;;  %v448_v29 = vsel %vm447_vm4, %v1648_v12, %v444_v23 }
 0x557   :  { %v453_v34 = vsel %vm450_vm5, %v452_v30, %v448_v29  ;;  %v516_v50 = vmul.f32 %v513_v25, %v2010_v44 }
 0x558   :  { %v456_v45 = vmul.f32 %v453_v34, %v2006_v31 }
 0x5af   :  { %v519_v24 = vpop.permute.xlu1 %518 }
 0x5b0   :  { %v521_v27 = vmul.f32 %v519_v24, %v513_v25 }
 0x5b2   :  { %523 = vrot.lane.b32.xlu0 %v521_v27, %s1863_s13 }
 0x5b5   :  { %v459_v32 = vpop.permute.xlu0 %458 }
 0x5b6   :  { %v461_v41 = vmul.f32 %v459_v32, %v453_v34 }
 0x5b8   :  { %463 = vrot.lane.b32.xlu2 %v461_v41, %s1863_s13 }
 0x612   :  { %v464_v46 = vpop.permute.xlu2 %463 }
 0x613   :  { %v2040_v48 = vadd.f32 %v464_v46, %v456_v45 }
 0x615   :  { %1649 = vtanh.f32 %v2040_v48 }
 0x61b   :  { %v1650_v49 = vpop.eup %1649 }
 0x61c   :  { %469 = vrot.lane.b32.xlu1 %v1650_v49, %s1863_s13 }
 0x624   :  { %v524_v33 = vpop.permute.xlu0 %523 }
 0x625   :  { %v2045_v51 = vadd.f32 %v524_v33, %v516_v50 }
 0x627   :  { %1651 = vtanh.f32 %v2045_v51 }
 0x62d   :  { %v1652_v52 = vpop.eup %1651 }
 0x62e   :  { %529 = vrot.lane.b32.xlu2 %v1652_v52, %s1863_s13 }
 0x688   :  { %v530_v31 = vpop.permute.xlu2 %529 }
 0x689   :  { %v532_v54 = vmul.f32 %v530_v31, %v513_v25 }
 0x68b   :  { %559 = vrot.lane.b32.xlu1 %v532_v54, %s1864_s14 }
 0x68e   :  { %v470_v55 = vpop.permute.xlu1 %469 }
 0x68f   :  { %v472_v56 = vmul.f32 %v470_v55, %v453_v34 }
 0x691   :  { %534 = vrot.lane.b32.xlu0 %v472_v56, %s1864_s14 }
 0x6fd   :  { %v560_v44 = vpop.permute.xlu1 %559 }
 0x6fe   :  { %1571 = vmatmul.msk.f32.vlgmr.msra.gmra.mxu3 %vm87_vm0, %v560_v44  ;;  %1573 = vmatmul.msk.f32.vlgmr.msrb.gmra.mxu1 %vm87_vm0, %v560_v44 }
 0x6ff   :  { %871 = vmatpush.msra.mxu3 %v1950_v37  ;;  %931 = vmatpush.msrb.mxu1 %v1912_v2 }
 0x701   :  { %872 = vmatpush.msra.mxu3 %v1954_v38  ;;  %932 = vmatpush.msrb.mxu1 %v1915_v3 }
 0x703   :  { %v535_v57 = vpop.permute.xlu0 %534  ;;  %873 = vmatpush.msra.mxu3 %v1958_v40  ;;  %933 = vmatpush.msrb.mxu1 %v1917_v5 }
 0x704   :  { %1570 = vmatmul.msk.f32.vlgmr.msra.gmra.mxu2 %vm87_vm0, %v535_v57 }
 0x705   :  { %874 = vmatpush.msra.mxu3 %v1965_v43  ;;  %934 = vmatpush.msrb.mxu1 %v1920_v7 }
 0x706   :  { %846 = vmatpush.msra.mxu2 %v1946_v35 }
 0x708   :  { %847 = vmatpush.msra.mxu2 %v1948_v36 }
 0x70a   :  { %848 = vmatpush.msra.mxu2 %v1956_v39 }
 0x70c   :  { %849 = vmatpush.msra.mxu2 %v1962_v42 }
 0x77b   :  { %v640_v60 = vpop.f32.mrf.mxu1 }
 0x77c   :  { %v643_v61 = vadd.f32 %v640_v60, %v139_v59 }
 0x77e   :  { %1653 = vtanh.f32 %v643_v61  ;;  %v1574_v11 = vmul.f32 -1.442695, %v643_v61  ;;  %v75_v61 = vld [vmem:[#allocation3 + $0x20] sm:$0xff] }
 0x77f   :  { %1555 = vmatmul.msk.f32.gmra.mxu0 %vm87_vm0, %v75_v61 }
 0x781   :  { %v580_v1 = vpop.f32.mrf.mxu3 }
 0x784   :  { %v1654_v62 = vpop.eup %1653 }
 0x785   :  { %666 = vrot.lane.b32.xlu0 %v1654_v62, %s1863_s13 }
 0x787   :  { %v555_v63 = vpop.f32.mrf.mxu2 }
 0x788   :  { %v556_v0 = vadd.f32 %v1998_v47, %v555_v63 }
 0x78a   :  { %v583_v4 = vadd.f32 %v580_v1, %v556_v0 }
 0x78c   :  { %1655 = vtanh.f32 %v583_v4  ;;  %v1572_v8 = vmul.f32 -1.442695, %v583_v4 }
 0x78e   :  { %1657 = vpow2.f32 %v1572_v8 }
 0x78f   :  { %1659 = vpow2.f32 %v1574_v11 }
 0x792   :  { %v1656_v6 = vpop.eup %1655 }
 0x793   :  { %606 = vrot.lane.b32.xlu2 %v1656_v6, %s1863_s13 }
 0x794   :  { %v1658_v9 = vpop.eup %1657 }
 0x795   :  { %v587_v12 = vadd.f32 1.0, %v1658_v9  ;;  %v1660_v13 = vpop.eup %1659 }
 0x796   :  { %v647_v15 = vadd.f32 1.0, %v1660_v13 }
 0x797   :  { %1661 = vrcp.f32 %v587_v12  ;;  %v599_v22 = vand.u32 2147483648, %v587_v12  ;;  %vm593_vm7 = vweird.f32 %v587_v12  ;;  %v597_v23 = vand.u32 2147483647, %v587_v12 }
 0x798   :  { %1663 = vrcp.f32 %v647_v15  ;;  %v659_v34 = vand.u32 2147483648, %v647_v15  ;;  %vm653_vm11 = vweird.f32 %v647_v15  ;;  %v657_v41 = vand.u32 2147483647, %v647_v15 }
 0x799   :  { %v600_v26 = vor.u32 1.1754944e-38, %v599_v22  ;;  %vm598_vm9 = vcmp.eq.f32.partialorder %v597_v23, 8.507059e+37 }
 0x79a   :  { %v660_v46 = vor.u32 1.1754944e-38, %v659_v34  ;;  %vm658_vm13 = vcmp.eq.f32.partialorder %v657_v41, 8.507059e+37 }
 0x79d   :  { %v1662_v14 = vpop.eup %1661 }
 0x79e   :  { %v589_v16 = vmul.f32 %v1662_v14, %v587_v12  ;;  %v1664_v18 = vpop.eup %1663  ;;  %vm594_vm6 = vweird.f32 %v1662_v14 }
 0x79f   :  { %v649_v20 = vmul.f32 %v1664_v18, %v647_v15  ;;  %vm595_vm8 = vmor %vm593_vm7, %vm594_vm6  ;;  %vm654_vm10 = vweird.f32 %v1664_v18 }
 0x7a0   :  { %v590_v17 = vsub.f32 1.0, %v589_v16  ;;  %vm655_vm12 = vmor %vm653_vm11, %vm654_vm10 }
 0x7a1   :  { %v650_v24 = vsub.f32 1.0, %v649_v20 }
 0x7a2   :  { %v591_v19 = vmul.f32 %v1662_v14, %v590_v17 }
 0x7a3   :  { %v651_v27 = vmul.f32 %v1664_v18, %v650_v24 }
 0x7a4   :  { %v592_v21 = vadd.f32 %v1662_v14, %v591_v19 }
 0x7a5   :  { %v652_v32 = vadd.f32 %v1664_v18, %v651_v27 }
 0x7a6   :  { %v596_v25 = vsel %vm595_vm8, %v1662_v14, %v592_v21 }
 0x7a7   :  { %v601_v29 = vsel %vm598_vm9, %v600_v26, %v596_v25  ;;  %v656_v45 = vsel %vm655_vm12, %v1664_v18, %v652_v32 }
 0x7a8   :  { %v661_v50 = vsel %vm658_vm13, %v660_v46, %v656_v45  ;;  %v604_v55 = vmul.f32 %v601_v29, %v2040_v48 }
 0x7a9   :  { %v664_v52 = vmul.f32 %v661_v50, %v2045_v51 }
 0x7ed   :  { %v607_v28 = vpop.permute.xlu2 %606 }
 0x7ee   :  { %v609_v30 = vmul.f32 %v607_v28, %v601_v29 }
 0x7f0   :  { %611 = vrot.lane.b32.xlu1 %v609_v30, %s1863_s13 }
 0x7f7   :  { %v667_v49 = vpop.permute.xlu0 %666 }
 0x7f8   :  { %v669_v33 = vmul.f32 %v667_v49, %v661_v50 }
 0x7fa   :  { %671 = vrot.lane.b32.xlu2 %v669_v33, %s1863_s13 }
 0x7fc   :  { %v141_v63 = vpop.f32.mrf.mxu0 }
 0x7fd   :  { %v142_v0 = vadd.f32 %v1937_v10, %v141_v63  ;;  %v76_v63 = vld [vmem:[#allocation3 + $0x28] sm:$0xff] }
 0x7fe   :  { %1556 = vmatmul.msk.f32.gmra.mxu0 %vm87_vm0, %v76_v63 }
 0x854   :  { %v672_v53 = vpop.permute.xlu2 %671 }
 0x855   :  { %v2074_v31 = vadd.f32 %v672_v53, %v664_v52 }
 0x857   :  { %1665 = vtanh.f32 %v2074_v31 }
 0x85d   :  { %v1666_v54 = vpop.eup %1665 }
 0x85e   :  { %677 = vrot.lane.b32.xlu1 %v1666_v54, %s1863_s13 }
 0x862   :  { %v612_v56 = vpop.permute.xlu1 %611 }
 0x863   :  { %v2079_v44 = vadd.f32 %v612_v56, %v604_v55 }
 0x865   :  { %1667 = vtanh.f32 %v2079_v44 }
 0x86b   :  { %v1668_v57 = vpop.eup %1667 }
 0x86c   :  { %617 = vrot.lane.b32.xlu0 %v1668_v57, %s1863_s13 }
 0x8d0   :  { %v678_v58 = vpop.permute.xlu1 %677 }
 0x8d1   :  { %v680_v51 = vmul.f32 %v678_v58, %v661_v50 }
 0x8d3   :  { %707 = vrot.lane.b32.xlu0 %v680_v51, %s1864_s14 }
 0x8de   :  { %v618_v59 = vpop.permute.xlu0 %617 }
 0x8df   :  { %v620_v60 = vmul.f32 %v618_v59, %v601_v29 }
 0x8e1   :  { %682 = vrot.lane.b32.xlu2 %v620_v60, %s1864_s14 }
 0x93b   :  { %v683_v48 = vpop.permute.xlu2 %682 }
 0x93c   :  { %1575 = vmatmul.msk.f32.vlgmr.msrb.gmra.mxu2 %vm87_vm0, %v683_v48 }
 0x93d   :  { %994 = vmatpush.msrb.mxu2 %v1946_v35 }
 0x93f   :  { %995 = vmatpush.msrb.mxu2 %v1948_v36 }
 0x941   :  { %996 = vmatpush.msrb.mxu2 %v1956_v39 }
 0x943   :  { %997 = vmatpush.msrb.mxu2 %v1962_v42 }
 0x945   :  { %v708_v62 = vpop.permute.xlu0 %707 }
 0x946   :  { %1576 = vmatmul.msk.f32.vlgmr.msrb.gmra.mxu3 %vm87_vm0, %v708_v62  ;;  %1578 = vmatmul.msk.f32.vlgmr.msra.gmra.mxu1 %vm87_vm0, %v708_v62 }
 0x947   :  { %1019 = vmatpush.msrb.mxu3 %v1950_v37  ;;  %1079 = vmatpush.msra.mxu1 %v1912_v2 }
 0x949   :  { %1020 = vmatpush.msrb.mxu3 %v1954_v38  ;;  %1080 = vmatpush.msra.mxu1 %v1915_v3 }
 0x94b   :  { %1021 = vmatpush.msrb.mxu3 %v1958_v40  ;;  %1081 = vmatpush.msra.mxu1 %v1917_v5 }
 0x94d   :  { %1022 = vmatpush.msrb.mxu3 %v1965_v43  ;;  %1082 = vmatpush.msra.mxu1 %v1920_v7 }
 0x9bf   :  { %v703_v6 = vpop.f32.mrf.mxu2 }
 0x9c0   :  { %v704_v8 = vadd.f32 %v1998_v47, %v703_v6 }
 0x9c3   :  { %v788_v1 = vpop.f32.mrf.mxu1 }
 0x9c4   :  { %v791_v4 = vadd.f32 %v788_v1, %v142_v0 }
 0x9c6   :  { %1669 = vtanh.f32 %v791_v4  ;;  %v1579_v14 = vmul.f32 -1.442695, %v791_v4 }
 0x9c9   :  { %v728_v9 = vpop.f32.mrf.mxu3 }
 0x9ca   :  { %v731_v11 = vadd.f32 %v728_v9, %v704_v8 }
 0x9cc   :  { %v1670_v12 = vpop.eup %1669  ;;  %1671 = vtanh.f32 %v731_v11  ;;  %v1577_v19 = vmul.f32 -1.442695, %v731_v11 }
 0x9cd   :  { %814 = vrot.lane.b32.xlu2 %v1670_v12, %s1863_s13  ;;  %1673 = vpow2.f32 %v1579_v14 }
 0x9d2   :  { %v1672_v13 = vpop.eup %1671 }
 0x9d3   :  { %754 = vrot.lane.b32.xlu1 %v1672_v13, %s1863_s13  ;;  %v1674_v15 = vpop.eup %1673 }
 0x9d4   :  { %v795_v16 = vadd.f32 1.0, %v1674_v15 }
 0x9d6   :  { %1675 = vrcp.f32 %v795_v16  ;;  %v807_v23 = vand.u32 2147483648, %v795_v16  ;;  %vm801_vm15 = vweird.f32 %v795_v16  ;;  %v805_v25 = vand.u32 2147483647, %v795_v16 }
 0x9d7   :  { %1677 = vpow2.f32 %v1577_v19 }
 0x9d8   :  { %v808_v28 = vor.u32 1.1754944e-38, %v807_v23  ;;  %vm806_vm2 = vcmp.eq.f32.partialorder %v805_v25, 8.507059e+37 }
 0x9dc   :  { %v1676_v17 = vpop.eup %1675 }
 0x9dd   :  { %v797_v18 = vmul.f32 %v1676_v17, %v795_v16  ;;  %vm802_vm14 = vweird.f32 %v1676_v17  ;;  %v1678_v24 = vpop.eup %1677 }
 0x9de   :  { %vm803_vm1 = vmor %vm801_vm15, %vm802_vm14  ;;  %v735_v27 = vadd.f32 1.0, %v1678_v24 }
 0x9df   :  { %v798_v20 = vsub.f32 1.0, %v797_v18 }
 0x9e0   :  { %1679 = vrcp.f32 %v735_v27  ;;  %v747_v50 = vand.u32 2147483648, %v735_v27  ;;  %vm741_vm4 = vweird.f32 %v735_v27  ;;  %v745_v33 = vand.u32 2147483647, %v735_v27 }
 0x9e1   :  { %v799_v21 = vmul.f32 %v1676_v17, %v798_v20 }
 0x9e2   :  { %v748_v53 = vor.u32 1.1754944e-38, %v747_v50  ;;  %vm746_vm6 = vcmp.eq.f32.partialorder %v745_v33, 8.507059e+37 }
 0x9e3   :  { %v800_v22 = vadd.f32 %v1676_v17, %v799_v21 }
 0x9e5   :  { %v804_v26 = vsel %vm803_vm1, %v1676_v17, %v800_v22 }
 0x9e6   :  { %v809_v30 = vsel %vm806_vm2, %v808_v28, %v804_v26  ;;  %v1680_v34 = vpop.eup %1679 }
 0x9e7   :  { %v737_v41 = vmul.f32 %v1680_v34, %v735_v27  ;;  %vm742_vm3 = vweird.f32 %v1680_v34  ;;  %v812_v57 = vmul.f32 %v809_v30, %v2074_v31 }
 0x9e8   :  { %vm743_vm5 = vmor %vm741_vm4, %vm742_vm3 }
 0x9e9   :  { %v738_v45 = vsub.f32 1.0, %v737_v41 }
 0x9eb   :  { %v739_v46 = vmul.f32 %v1680_v34, %v738_v45 }
 0x9ed   :  { %v740_v49 = vadd.f32 %v1680_v34, %v739_v46 }
 0x9ef   :  { %v744_v52 = vsel %vm743_vm5, %v1680_v34, %v740_v49 }
 0x9f0   :  { %v749_v55 = vsel %vm746_vm6, %v748_v53, %v744_v52 }
 0x9f1   :  { %v752_v60 = vmul.f32 %v749_v55, %v2079_v44 }
 0xa27   :  { %v815_v29 = vpop.permute.xlu2 %814 }
 0xa28   :  { %v817_v32 = vmul.f32 %v815_v29, %v809_v30 }
 0xa2a   :  { %819 = vrot.lane.b32.xlu1 %v817_v32, %s1863_s13 }
 0xa45   :  { %v755_v54 = vpop.permute.xlu1 %754 }
 0xa46   :  { %v757_v56 = vmul.f32 %v755_v54, %v749_v55 }
 0xa48   :  { %759 = vrot.lane.b32.xlu0 %v757_v56, %s1863_s13 }
 0xa9c   :  { %v820_v58 = vpop.permute.xlu1 %819 }
 0xa9d   :  { %v2108_v51 = vadd.f32 %v820_v58, %v812_v57 }
 0xa9f   :  { %1681 = vtanh.f32 %v2108_v51 }
 0xaa5   :  { %v1682_v59 = vpop.eup %1681 }
 0xaa6   :  { %825 = vrot.lane.b32.xlu0 %v1682_v59, %s1863_s13 }
 0xaba   :  { %v760_v61 = vpop.permute.xlu0 %759 }
 0xabb   :  { %v2113_v48 = vadd.f32 %v760_v61, %v752_v60 }
 0xabd   :  { %1683 = vtanh.f32 %v2113_v48 }
 0xac3   :  { %v1684_v62 = vpop.eup %1683 }
 0xac4   :  { %765 = vrot.lane.b32.xlu2 %v1684_v62, %s1863_s13 }
 0xb18   :  { %v826_v31 = vpop.permute.xlu0 %825 }
 0xb19   :  { %v828_v0 = vmul.f32 %v826_v31, %v809_v30  ;;  %v77_v31 = vld [vmem:[#allocation3 + $0x30] sm:$0xff] }
 0xb1a   :  { %1557 = vmatmul.msk.f32.gmra.mxu0 %vm87_vm0, %v77_v31 }
 0xb1b   :  { %855 = vrot.lane.b32.xlu2 %v828_v0, %s1864_s14 }
 0xb1e   :  { %v766_v1 = vpop.permute.xlu2 %765 }
 0xb1f   :  { %v768_v4 = vmul.f32 %v766_v1, %v749_v55 }
 0xb21   :  { %830 = vrot.lane.b32.xlu1 %v768_v4, %s1864_s14 }
 0xb75   :  { %v856_v44 = vpop.permute.xlu2 %855 }
 0xb76   :  { %1581 = vmatmul.msk.f32.vlgmr.msra.gmra.mxu3 %vm87_vm0, %v856_v44  ;;  %1583 = vmatmul.msk.f32.vlgmr.msrb.gmra.mxu1 %vm87_vm0, %v856_v44  ;;  %v1751_v44 = vld [vmem:[#allocation8 + $0x38] sm:$0xff] }
 0xb77   :  { %1167 = vmatpush.msra.mxu3 %v1950_v37  ;;  %1227 = vmatpush.msrb.mxu1 %v1912_v2  ;;  %v144_v2 = vpop.f32.mrf.mxu0 }
 0xb79   :  { %1168 = vmatpush.msra.mxu3 %v1954_v38  ;;  %1228 = vmatpush.msrb.mxu1 %v1915_v3  ;;  %v145_v3 = vadd.f32 %v1937_v10, %v144_v2 }
 0xb7b   :  { %1169 = vmatpush.msra.mxu3 %v1958_v40  ;;  %1229 = vmatpush.msrb.mxu1 %v1917_v5 }
 0xb7d   :  { %1170 = vmatpush.msra.mxu3 %v1965_v43  ;;  %1230 = vmatpush.msrb.mxu1 %v1920_v7 }
 0xb93   :  { %v831_v6 = vpop.permute.xlu1 %830 }
 0xb94   :  { %1580 = vmatmul.msk.f32.vlgmr.msra.gmra.mxu2 %vm87_vm0, %v831_v6  ;;  %v1752_v6 = vld [vmem:[#allocation8 + $0x30] sm:$0xff] }
 0xb95   :  { %1142 = vmatpush.msra.mxu2 %v1946_v35 }
 0xb97   :  { %1143 = vmatpush.msra.mxu2 %v1948_v36  ;;  %v147_v2 = vpop.f32.mrf.mxu0 }
 0xb99   :  { %1144 = vmatpush.msra.mxu2 %v1956_v39 }
 0xb9b   :  { %1145 = vmatpush.msra.mxu2 %v1962_v42 }
 0xbf3   :  { %v936_v8 = vpop.f32.mrf.mxu1 }
 0xbf4   :  { %v939_v5 = vadd.f32 %v936_v8, %v145_v3 }
 0xbf6   :  { %1685 = vtanh.f32 %v939_v5  ;;  %v1584_v13 = vmul.f32 -1.442695, %v939_v5 }
 0xbf9   :  { %v876_v12 = vpop.f32.mrf.mxu3 }
 0xbfc   :  { %v1686_v9 = vpop.eup %1685 }
 0xbfd   :  { %962 = vrot.lane.b32.xlu1 %v1686_v9, %s1863_s13 }
 0xc17   :  { %v851_v7 = vpop.f32.mrf.mxu2 }
 0xc18   :  { %v852_v11 = vadd.f32 %v1998_v47, %v851_v7 }
 0xc1a   :  { %v879_v35 = vadd.f32 %v876_v12, %v852_v11 }
 0xc1c   :  { %1687 = vtanh.f32 %v879_v35  ;;  %v1582_v19 = vmul.f32 -1.442695, %v879_v35 }
 0xc1d   :  { %1689 = vpow2.f32 %v1584_v13 }
 0xc22   :  { %v1688_v36 = vpop.eup %1687 }
 0xc23   :  { %902 = vrot.lane.b32.xlu0 %v1688_v36, %s1863_s13  ;;  %v1690_v14 = vpop.eup %1689 }
 0xc24   :  { %v943_v15 = vadd.f32 1.0, %v1690_v14 }
 0xc26   :  { %1691 = vrcp.f32 %v943_v15  ;;  %v955_v21 = vand.u32 2147483648, %v943_v15  ;;  %vm949_vm8 = vweird.f32 %v943_v15  ;;  %v953_v22 = vand.u32 2147483647, %v943_v15 }
 0xc27   :  { %1693 = vpow2.f32 %v1582_v19 }
 0xc28   :  { %v956_v24 = vor.u32 1.1754944e-38, %v955_v21  ;;  %vm954_vm10 = vcmp.eq.f32.partialorder %v953_v22, 8.507059e+37 }
 0xc2c   :  { %v1692_v10 = vpop.eup %1691 }
 0xc2d   :  { %v945_v16 = vmul.f32 %v1692_v10, %v943_v15  ;;  %vm950_vm7 = vweird.f32 %v1692_v10  ;;  %v1694_v28 = vpop.eup %1693 }
 0xc2e   :  { %vm951_vm9 = vmor %vm949_vm8, %vm950_vm7  ;;  %v883_v29 = vadd.f32 1.0, %v1694_v28 }
 0xc2f   :  { %v946_v17 = vsub.f32 1.0, %v945_v16 }
 0xc30   :  { %1695 = vrcp.f32 %v883_v29  ;;  %v895_v46 = vand.u32 2147483648, %v883_v29  ;;  %vm889_vm12 = vweird.f32 %v883_v29  ;;  %v893_v49 = vand.u32 2147483647, %v883_v29 }
 0xc31   :  { %v947_v18 = vmul.f32 %v1692_v10, %v946_v17 }
 0xc32   :  { %v896_v33 = vor.u32 1.1754944e-38, %v895_v46  ;;  %vm894_vm14 = vcmp.eq.f32.partialorder %v893_v49, 8.507059e+37 }
 0xc33   :  { %v948_v20 = vadd.f32 %v1692_v10, %v947_v18 }
 0xc35   :  { %v952_v23 = vsel %vm951_vm9, %v1692_v10, %v948_v20 }
 0xc36   :  { %v957_v26 = vsel %vm954_vm10, %v956_v24, %v952_v23  ;;  %v1696_v30 = vpop.eup %1695 }
 0xc37   :  { %v885_v32 = vmul.f32 %v1696_v30, %v883_v29  ;;  %vm890_vm11 = vweird.f32 %v1696_v30  ;;  %v960_v55 = vmul.f32 %v957_v26, %v2108_v51 }
 0xc38   :  { %vm891_vm13 = vmor %vm889_vm12, %vm890_vm11 }
 0xc39   :  { %v886_v34 = vsub.f32 1.0, %v885_v32 }
 0xc3b   :  { %v887_v41 = vmul.f32 %v1696_v30, %v886_v34 }
 0xc3d   :  { %v888_v45 = vadd.f32 %v1696_v30, %v887_v41 }
 0xc3f   :  { %v892_v50 = vsel %vm891_vm13, %v1696_v30, %v888_v45 }
 0xc40   :  { %v897_v53 = vsel %vm894_vm14, %v896_v33, %v892_v50 }
 0xc41   :  { %v900_v59 = vmul.f32 %v897_v53, %v2113_v48 }
 0xc6f   :  { %v963_v25 = vpop.permute.xlu1 %962 }
 0xc70   :  { %v965_v27 = vmul.f32 %v963_v25, %v957_v26 }
 0xc72   :  { %967 = vrot.lane.b32.xlu0 %v965_v27, %s1863_s13 }
 0xc95   :  { %v903_v52 = vpop.permute.xlu0 %902 }
 0xc96   :  { %v905_v54 = vmul.f32 %v903_v52, %v897_v53 }
 0xc98   :  { %907 = vrot.lane.b32.xlu2 %v905_v54, %s1863_s13 }
 0xce4   :  { %v968_v56 = vpop.permute.xlu0 %967 }
 0xce5   :  { %v2142_v57 = vadd.f32 %v968_v56, %v960_v55 }
 0xce7   :  { %1697 = vtanh.f32 %v2142_v57 }
 0xced   :  { %v1698_v58 = vpop.eup %1697 }
 0xcee   :  { %973 = vrot.lane.b32.xlu2 %v1698_v58, %s1863_s13 }
 0xcf2   :  { %v908_v60 = vpop.permute.xlu2 %907 }
 0xcf3   :  { %v2147_v61 = vadd.f32 %v908_v60, %v900_v59  ;;  %v78_v59 = vld [vmem:[#allocation3 + $0x38] sm:$0xff] }
 0xcf4   :  { %1558 = vmatmul.msk.f32.gmra.mxu0 %vm87_vm0, %v78_v59 }
 0xcf5   :  { %1699 = vtanh.f32 %v2147_v61 }
 0xcfb   :  { %v1700_v62 = vpop.eup %1699 }
 0xcfc   :  { %913 = vrot.lane.b32.xlu1 %v1700_v62, %s1863_s13 }
 0xd48   :  { %v974_v63 = vpop.permute.xlu2 %973 }
 0xd49   :  { %v976_v51 = vmul.f32 %v974_v63, %v957_v26 }
 0xd4b   :  { %1003 = vrot.lane.b32.xlu1 %v976_v51, %s1864_s14 }
 0xd6e   :  { %v914_v0 = vpop.permute.xlu1 %913 }
 0xd6f   :  { %v916_v1 = vmul.f32 %v914_v0, %v897_v53 }
 0xd71   :  { %978 = vrot.lane.b32.xlu0 %v916_v1, %s1864_s14  ;;  %v150_v51 = vpop.f32.mrf.mxu0 }
 0xdbd   :  { %v1004_v48 = vpop.permute.xlu1 %1003 }
 0xdbe   :  { %1586 = vmatmul.msk.f32.vlgmr.msrb.gmra.mxu3 %vm87_vm0, %v1004_v48  ;;  %1588 = vmatmul.msk.f32.vlgmr.msra.gmra.mxu1 %vm87_vm0, %v1004_v48 }
 0xdbf   :  { %1315 = vmatpush.msrb.mxu3 %v1950_v37  ;;  %v2166_v37 = vld [vmem:[%s2287_s3] ss:$0 sm:$0xff] }
 0xdc0   :  { %v151_v31 = vadd.f32 %v2166_v37, %v150_v51 }
 0xdc1   :  { %1316 = vmatpush.msrb.mxu3 %v1954_v38  ;;  %v148_v38 = vadd.f32 %v2166_v37, %v147_v2 }
 0xdc3   :  { %1317 = vmatpush.msrb.mxu3 %v1958_v40 }
 0xdc5   :  { %1318 = vmatpush.msrb.mxu3 %v1965_v43 }
 0xde3   :  { %v979_v4 = vpop.permute.xlu0 %978 }
 0xde4   :  { %1585 = vmatmul.msk.f32.vlgmr.msrb.gmra.mxu2 %vm87_vm0, %v979_v4 }
 0xde5   :  { %1290 = vmatpush.msrb.mxu2 %v1751_v44  ;;  %v2195_v44 = vld [vmem:[%s2287_s3 + $0x1] ss:$0 sm:$0xff]  ;;  %s1865_s3 = smov 96  }
 0xde7   :  { %1291 = vmatpush.msrb.mxu2 %v1752_v6 }
 0xde9   :  { %1292 = vmatpush.msrb.mxu2 %v1956_v39 }
 0xdeb   :  { %1293 = vmatpush.msrb.mxu2 %v1962_v42 }
 0xe3b   :  { %v1084_v40 = vpop.f32.mrf.mxu1 }
 0xe3c   :  { %v1087_v43 = vadd.f32 %v1084_v40, %v148_v38 }
 0xe3e   :  { %1701 = vtanh.f32 %v1087_v43  ;;  %v1589_v7 = vmul.f32 -1.442695, %v1087_v43 }
 0xe41   :  { %v1024_v39 = vpop.f32.mrf.mxu3 }
 0xe44   :  { %v1702_v3 = vpop.eup %1701 }
 0xe45   :  { %1110 = vrot.lane.b32.xlu0 %v1702_v3, %s1863_s13 }
 0xe67   :  { %v999_v8 = vpop.f32.mrf.mxu2 }
 0xe68   :  { %v1000_v5 = vadd.f32 %v1998_v47, %v999_v8 }
 0xe6a   :  { %v1027_v9 = vadd.f32 %v1024_v39, %v1000_v5 }
 0xe6c   :  { %1703 = vtanh.f32 %v1027_v9  ;;  %v1587_v35 = vmul.f32 -1.442695, %v1027_v9 }
 0xe6d   :  { %1705 = vpow2.f32 %v1589_v7 }
 0xe72   :  { %v1704_v42 = vpop.eup %1703 }
 0xe73   :  { %1050 = vrot.lane.b32.xlu2 %v1704_v42, %s1863_s13  ;;  %v1706_v11 = vpop.eup %1705 }
 0xe74   :  { %v1091_v12 = vadd.f32 1.0, %v1706_v11 }
 0xe76   :  { %1707 = vrcp.f32 %v1091_v12  ;;  %v1103_v17 = vand.u32 2147483648, %v1091_v12  ;;  %vm1097_vm1 = vweird.f32 %v1091_v12  ;;  %v1101_v18 = vand.u32 2147483647, %v1091_v12 }
 0xe77   :  { %1709 = vpow2.f32 %v1587_v35 }
 0xe78   :  { %v1104_v20 = vor.u32 1.1754944e-38, %v1103_v17  ;;  %vm1102_vm3 = vcmp.eq.f32.partialorder %v1101_v18, 8.507059e+37 }
 0xe7c   :  { %v1708_v36 = vpop.eup %1707 }
 0xe7d   :  { %v1093_v13 = vmul.f32 %v1708_v36, %v1091_v12  ;;  %v1710_v15 = vpop.eup %1709  ;;  %vm1098_vm15 = vweird.f32 %v1708_v36 }
 0xe7e   :  { %v1031_v16 = vadd.f32 1.0, %v1710_v15  ;;  %vm1099_vm2 = vmor %vm1097_vm1, %vm1098_vm15 }
 0xe7f   :  { %v1094_v14 = vsub.f32 1.0, %v1093_v13 }
 0xe80   :  { %1711 = vrcp.f32 %v1031_v16  ;;  %v1043_v29 = vand.u32 2147483648, %v1031_v16  ;;  %vm1037_vm5 = vweird.f32 %v1031_v16  ;;  %v1041_v30 = vand.u32 2147483647, %v1031_v16 }
 0xe81   :  { %v1095_v10 = vmul.f32 %v1708_v36, %v1094_v14 }
 0xe82   :  { %v1044_v34 = vor.u32 1.1754944e-38, %v1043_v29  ;;  %vm1042_vm7 = vcmp.eq.f32.partialorder %v1041_v30, 8.507059e+37 }
 0xe83   :  { %v1096_v47 = vadd.f32 %v1708_v36, %v1095_v10 }
 0xe85   :  { %v1100_v19 = vsel %vm1099_vm2, %v1708_v36, %v1096_v47 }
 0xe86   :  { %v1712_v21 = vpop.eup %1711  ;;  %v1105_v23 = vsel %vm1102_vm3, %v1104_v20, %v1100_v19 }
 0xe87   :  { %v1033_v25 = vmul.f32 %v1712_v21, %v1031_v16  ;;  %vm1038_vm4 = vweird.f32 %v1712_v21  ;;  %v1108_v49 = vmul.f32 %v1105_v23, %v2142_v57 }
 0xe88   :  { %vm1039_vm6 = vmor %vm1037_vm5, %vm1038_vm4 }
 0xe89   :  { %v1034_v26 = vsub.f32 1.0, %v1033_v25 }
 0xe8b   :  { %v1035_v27 = vmul.f32 %v1712_v21, %v1034_v26 }
 0xe8d   :  { %v1036_v28 = vadd.f32 %v1712_v21, %v1035_v27 }
 0xe8f   :  { %v1040_v32 = vsel %vm1039_vm6, %v1712_v21, %v1036_v28 }
 0xe90   :  { %v1045_v45 = vsel %vm1042_vm7, %v1044_v34, %v1040_v32 }
 0xe91   :  { %v1048_v53 = vmul.f32 %v1045_v45, %v2147_v61 }
 0xeb7   :  { %v1111_v22 = vpop.permute.xlu0 %1110 }
 0xeb8   :  { %v1113_v24 = vmul.f32 %v1111_v22, %v1105_v23 }
 0xeba   :  { %1115 = vrot.lane.b32.xlu2 %v1113_v24, %s1863_s13 }
 0xecd   :  { %v1051_v41 = vpop.permute.xlu2 %1050 }
 0xece   :  { %v1053_v46 = vmul.f32 %v1051_v41, %v1045_v45 }
 0xed0   :  { %1055 = vrot.lane.b32.xlu1 %v1053_v46, %s1863_s13 }
 0xf14   :  { %v1116_v50 = vpop.permute.xlu2 %1115 }
 0xf15   :  { %v2175_v33 = vadd.f32 %v1116_v50, %v1108_v49 }
 0xf17   :  { %1713 = vtanh.f32 %v2175_v33 }
 0xf1d   :  { %v1714_v52 = vpop.eup %1713 }
 0xf1e   :  { %1121 = vrot.lane.b32.xlu1 %v1714_v52, %s1863_s13 }
 0xf42   :  { %v1056_v54 = vpop.permute.xlu1 %1055 }
 0xf43   :  { %v2180_v55 = vadd.f32 %v1056_v54, %v1048_v53 }
 0xf45   :  { %1715 = vtanh.f32 %v2180_v55 }
 0xf4b   :  { %v1716_v56 = vpop.eup %1715 }
 0xf4c   :  { %1061 = vrot.lane.b32.xlu0 %v1716_v56, %s1863_s13 }
 0xf90   :  { %v1122_v58 = vpop.permute.xlu1 %1121 }
 0xf91   :  { %v1124_v57 = vmul.f32 %v1122_v58, %v1105_v23 }
 0xf93   :  { %1151 = vrot.lane.b32.xlu0 %v1124_v57, %s1864_s14 }
 0xfbe   :  { %v1062_v60 = vpop.permute.xlu0 %1061 }
 0xfbf   :  { %v1064_v62 = vmul.f32 %v1062_v60, %v1045_v45 }
 0xfc1   :  { %1126 = vrot.lane.b32.xlu2 %v1064_v62, %s1864_s14 }
0x1005   :  { %v1152_v61 = vpop.permute.xlu0 %1151 }
0x1006   :  { %1591 = vmatmul.msk.f32.vlgmr.msra.gmra.mxu3 %vm87_vm0, %v1152_v61  ;;  %1593 = vmatmul.msk.f32.vlgmr.msrb.gmra.mxu1 %vm87_vm0, %v1152_v61 }
0x101b   :  { %v1127_v63 = vpop.permute.xlu2 %1126 }
0x101c   :  { %1590 = vmatmul.msk.f32.vlgmr.msra.gmra.mxu2 %vm87_vm0, %v1127_v63 }
0x1083   :  { %v1232_v0 = vpop.f32.mrf.mxu1 }
0x1084   :  { %v1235_v1 = vadd.f32 %v1232_v0, %v151_v31 }
0x1086   :  { %1717 = vtanh.f32 %v1235_v1  ;;  %v1594_v37 = vmul.f32 -1.442695, %v1235_v1 }
0x1089   :  { %v1172_v2 = vpop.f32.mrf.mxu3 }
0x108c   :  { %v1718_v48 = vpop.eup %1717 }
0x108d   :  { %1258 = vrot.lane.b32.xlu2 %v1718_v48, %s1863_s13 }
0x109f   :  { %v1147_v4 = vpop.f32.mrf.mxu2 }
0x10a0   :  { %v1148_v6 = vadd.f32 %v2195_v44, %v1147_v4 }
0x10a2   :  { %v1175_v38 = vadd.f32 %v1172_v2, %v1148_v6 }
0x10a4   :  { %1719 = vtanh.f32 %v1175_v38  ;;  %v1592_v15 = vmul.f32 -1.442695, %v1175_v38 }
0x10a5   :  { %1721 = vpow2.f32 %v1594_v37 }
0x10aa   :  { %v1720_v40 = vpop.eup %1719 }
0x10ab   :  { %1198 = vrot.lane.b32.xlu1 %v1720_v40, %s1863_s13  ;;  %v1722_v43 = vpop.eup %1721 }
0x10ac   :  { %v1239_v3 = vadd.f32 1.0, %v1722_v43 }
0x10ae   :  { %1723 = vrcp.f32 %v1239_v3  ;;  %v1251_v7 = vand.u32 2147483648, %v1239_v3  ;;  %vm1245_vm9 = vweird.f32 %v1239_v3  ;;  %v1249_v11 = vand.u32 2147483647, %v1239_v3 }
0x10af   :  { %1725 = vpow2.f32 %v1592_v15 }
0x10b0   :  { %v1252_v35 = vor.u32 1.1754944e-38, %v1251_v7  ;;  %vm1250_vm11 = vcmp.eq.f32.partialorder %v1249_v11, 8.507059e+37 }
0x10b4   :  { %v1724_v8 = vpop.eup %1723 }
0x10b5   :  { %v1241_v5 = vmul.f32 %v1724_v8, %v1239_v3  ;;  %vm1246_vm8 = vweird.f32 %v1724_v8  ;;  %v1726_v10 = vpop.eup %1725 }
0x10b6   :  { %vm1247_vm10 = vmor %vm1245_vm9, %vm1246_vm8  ;;  %v1179_v16 = vadd.f32 1.0, %v1726_v10 }
0x10b7   :  { %v1242_v39 = vsub.f32 1.0, %v1241_v5 }
0x10b8   :  { %1727 = vrcp.f32 %v1179_v16  ;;  %v1191_v21 = vand.u32 2147483648, %v1179_v16  ;;  %vm1185_vm13 = vweird.f32 %v1179_v16  ;;  %v1189_v22 = vand.u32 2147483647, %v1179_v16 }
0x10b9   :  { %v1243_v9 = vmul.f32 %v1724_v8, %v1242_v39 }
0x10ba   :  { %v1192_v24 = vor.u32 1.1754944e-38, %v1191_v21  ;;  %vm1190_vm15 = vcmp.eq.f32.partialorder %v1189_v22, 8.507059e+37 }
0x10bb   :  { %v1244_v42 = vadd.f32 %v1724_v8, %v1243_v9 }
0x10bd   :  { %v1248_v12 = vsel %vm1247_vm10, %v1724_v8, %v1244_v42 }
0x10be   :  { %v1253_v13 = vsel %vm1250_vm11, %v1252_v35, %v1248_v12  ;;  %v1728_v47 = vpop.eup %1727  ;;  %v1866_v35 = vmov 32.0  }
0x10bf   :  { %v1181_v17 = vmul.f32 %v1728_v47, %v1179_v16  ;;  %vm1186_vm12 = vweird.f32 %v1728_v47  ;;  %v1256_v28 = vmul.f32 %v1253_v13, %v2175_v33 }
0x10c0   :  { %vm1187_vm14 = vmor %vm1185_vm13, %vm1186_vm12 }
0x10c1   :  { %v1182_v18 = vsub.f32 1.0, %v1181_v17 }
0x10c3   :  { %v1183_v19 = vmul.f32 %v1728_v47, %v1182_v18 }
0x10c5   :  { %v1184_v20 = vadd.f32 %v1728_v47, %v1183_v19 }
0x10c7   :  { %v1188_v23 = vsel %vm1187_vm14, %v1728_v47, %v1184_v20  ;;  %v1611_v20 = vld [vmem:[%s2289_s5] ss:$0 sm:$0xff] }
0x10c8   :  { %v1193_v26 = vsel %vm1190_vm15, %v1192_v24, %v1188_v23 }
0x10c9   :  { %v1196_v34 = vmul.f32 %v1193_v26, %v2180_v55 }
0x10e7   :  { %v1259_v36 = vpop.permute.xlu2 %1258 }
0x10e8   :  { %v1261_v14 = vmul.f32 %v1259_v36, %v1253_v13 }
0x10ea   :  { %1263 = vrot.lane.b32.xlu1 %v1261_v14, %s1863_s13 }
0x111d   :  { %v1199_v25 = vpop.permute.xlu1 %1198 }
0x111e   :  { %v1201_v27 = vmul.f32 %v1199_v25, %v1193_v26 }
0x1120   :  { %1203 = vrot.lane.b32.xlu0 %v1201_v27, %s1863_s13 }
0x115c   :  { %v1264_v29 = vpop.permute.xlu1 %1263 }
0x115d   :  { %v2202_v30 = vadd.f32 %v1264_v29, %v1256_v28 }
0x115f   :  { %1729 = vtanh.f32 %v2202_v30 }
0x1165   :  { %v1730_v32 = vpop.eup %1729 }
0x1166   :  { %1269 = vrot.lane.b32.xlu0 %v1730_v32, %s1863_s13 }
0x1192   :  { %v1204_v41 = vpop.permute.xlu0 %1203 }
0x1193   :  { %v1206_v45 = vadd.f32 %v1204_v41, %v1196_v34  ;;  %v1612_v41 = vld [vmem:[%s2288_s4] ss:$0 sm:$0xff]  ;;  %s1867_s4 = smov [#allocation9]  }
0x1194   :  { %s1538_s24 = sshll.u32 %s1867_s4, 4  ;;  %s1539_s24 = int_to_ptr.vmem [resolvable:$true] %s1538_s24 }
0x1195   :  { %1731 = vtanh.f32 %v1206_v45 }
0x119b   :  { %v1732_v46 = vpop.eup %1731 }
0x119c   :  { %1209 = vrot.lane.b32.xlu2 %v1732_v46, %s1863_s13 }
0x11d8   :  { %v1270_v49 = vpop.permute.xlu0 %1269 }
0x11d9   :  { %v2208_v50 = vmul.f32 %v1270_v49, %v1253_v13 }
0x11db   :  { %1299 = vrot.lane.b32.xlu2 %v2208_v50, %s1864_s14 }
0x11f6   :  { %v1210_v33 = vpop.permute.xlu2 %1209 }
0x11f7   :  { %v1212_v52 = vmul.f32 %v1210_v33, %v1193_v26 }
0x11f9   :  { %1274 = vrot.lane.b32.xlu1 %v1212_v52, %s1864_s14 }
0x1235   :  { %v1300_v53 = vpop.permute.xlu2 %1299 }
0x1236   :  { %1596 = vmatmul.msk.f32.vlgmr.msrb.gmra.mxu3 %vm87_vm0, %v1300_v53  ;;  %v1362_v12 = vsel %vm87_vm0, %v1300_v53, 0.0 }
0x126b   :  { %v1275_v54 = vpop.permute.xlu1 %1274 }
0x126c   :  { %1595 = vmatmul.msk.f32.vlgmr.msrb.gmra.mxu2 %vm87_vm0, %v1275_v54 }
0x12b9   :  { %v1320_v58 = vpop.f32.mrf.mxu3 }
0x12ef   :  { %v1295_v55 = vpop.f32.mrf.mxu2 }
0x12f0   :  { %v1296_v56 = vadd.f32 %v2195_v44, %v1295_v55 }
0x12f2   :  { %v1323_v57 = vadd.f32 %v1320_v58, %v1296_v56 }
0x12f4   :  { %1733 = vtanh.f32 %v1323_v57  ;;  %v1597_v60 = vmul.f32 -1.442695, %v1323_v57 }
0x12f6   :  { %1735 = vpow2.f32 %v1597_v60 }
0x12fa   :  { %v1734_v59 = vpop.eup %1733 }
0x12fb   :  { %1346 = vrot.lane.b32.xlu0 %v1734_v59, %s1863_s13 }
0x12fc   :  { %v1736_v62 = vpop.eup %1735 }
0x12fd   :  { %v1327_v61 = vadd.f32 1.0, %v1736_v62 }
0x12ff   :  { %1737 = vrcp.f32 %v1327_v61  ;;  %v1339_v48 = vand.u32 2147483648, %v1327_v61  ;;  %vm1333_vm2 = vweird.f32 %v1327_v61  ;;  %v1337_v4 = vand.u32 2147483647, %v1327_v61 }
0x1301   :  { %v1340_v6 = vor.u32 1.1754944e-38, %v1339_v48  ;;  %vm1338_vm4 = vcmp.eq.f32.partialorder %v1337_v4, 8.507059e+37 }
0x1305   :  { %v1738_v63 = vpop.eup %1737 }
0x1306   :  { %v1329_v51 = vmul.f32 %v1738_v63, %v1327_v61  ;;  %vm1334_vm1 = vweird.f32 %v1738_v63 }
0x1307   :  { %vm1335_vm3 = vmor %vm1333_vm2, %vm1334_vm1 }
0x1308   :  { %v1330_v31 = vsub.f32 1.0, %v1329_v51 }
0x130a   :  { %v1331_v0 = vmul.f32 %v1738_v63, %v1330_v31 }
0x130c   :  { %v1332_v1 = vadd.f32 %v1738_v63, %v1331_v0 }
0x130e   :  { %v1336_v44 = vsel %vm1335_vm3, %v1738_v63, %v1332_v1  ;;  %vm1528_vm3 = vcmask 523264  }
0x130f   :  { %v1341_v38 = vsel %vm1338_vm4, %v1340_v6, %v1336_v44  ;;  %vm1530_vm4 = vcmask 785408  }
0x1310   :  { %v1344_v37 = vmul.f32 %v1341_v38, %v1206_v45 }
0x136d   :  { %v1347_v2 = vpop.permute.xlu0 %1346 }
0x136e   :  { %v1349_v40 = vmul.f32 %v1347_v2, %v1341_v38 }
0x1370   :  { %1351 = vrot.lane.b32.xlu1 %v1349_v40, %s1863_s13 }
0x1378   :  { %1442 = vrot.lane.b32.xlu1 %v2202_v30, %s1865_s3 }
0x13e2   :  { %v1352_v43 = vpop.permute.xlu1 %1351 }
0x13e3   :  { %v1354_v3 = vadd.f32 %v1352_v43, %v1344_v37 }
0x13e5   :  { %1739 = vtanh.f32 %v1354_v3 }
0x13e6   :  { %1741 = vrcp.f32 %v1866_v35 }
0x13ea   :  { %v1443_v5 = vpop.permute.xlu1 %1442 }
0x13eb   :  { %v1740_v8 = vpop.eup %1739  ;;  %v1445_v39 = vsel %vm87_vm0, %v1443_v5, 0.0 }
0x13ec   :  { %1357 = vrot.lane.b32.xlu2 %v1740_v8, %s1863_s13  ;;  %v1742_v36 = vpop.eup %1741 }
0x13ed   :  { %v1366_v13 = vmul.f32 32.0, %v1742_v36  ;;  %vm1370_vm5 = vweird.f32 %v1742_v36 }
0x13ef   :  { %v1367_v14 = vsub.f32 1.0, %v1366_v13 }
0x13f1   :  { %v1368_v15 = vmul.f32 %v1742_v36, %v1367_v14 }
0x13f3   :  { %v1369_v10 = vadd.f32 %v1742_v36, %v1368_v15 }
0x13f4   :  { %1480 = vrot.lane.b32.xlu2 %v1354_v3, %s1865_s3 }
0x13f5   :  { %v2226_v16 = vsel %vm1370_vm5, %v1742_v36, %v1369_v10 }
0x141d   :  { %1446 = vadd.xlane.f32.xlu2 %v1445_v39 }
0x1446   :  { %v1358_v9 = vpop.permute.xlu2 %1357 }
0x1447   :  { %v1360_v42 = vmul.f32 %v1358_v9, %v1341_v38 }
0x1449   :  { %1410 = vrot.lane.b32.xlu0 %v1360_v42, %s1864_s14 }
0x144e   :  { %v1481_v7 = vpop.permute.xlu2 %1480 }
0x144f   :  { %v1483_v11 = vsel %vm87_vm0, %v1481_v7, 0.0 }
0x1450   :  { %1484 = vadd.xlane.f32.xlu2 %v1483_v11 }
0x1473   :  { %1363 = vadd.xlane.f32.xlu0 %v1362_v12 }
0x1490   :  { %v1447_v47 = vpop.xlane.xlu2 %1446 }
0x1491   :  { %v1448_v17 = vmul.f32 %v1447_v47, %v2226_v16 }
0x1493   :  { %v2230_v18 = vsub.f32 %v2202_v30, %v1448_v17 }
0x1495   :  { %v1450_v19 = vmul.f32 %v2230_v18, %v2230_v18 }
0x1497   :  { %1452 = vrot.lane.b32.xlu2 %v1450_v19, %s1865_s3 }
0x149f   :  { %1405 = vrot.lane.b32.xlu2 %v1611_v20, %s1864_s14 }
0x14bb   :  { %v1411_v21 = vpop.permute.xlu0 %1410 }
0x14bc   :  { %v1413_v22 = vsel %vm87_vm0, %v1411_v21, 0.0 }
0x14bd   :  { %1414 = vadd.xlane.f32.xlu1 %v1413_v22 }
0x14c3   :  { %v1485_v25 = vpop.xlane.xlu2 %1484 }
0x14c4   :  { %v1486_v27 = vmul.f32 %v1485_v25, %v2226_v16 }
0x14c6   :  { %v2244_v29 = vsub.f32 %v1354_v3, %v1486_v27 }
0x14c8   :  { %v1488_v34 = vmul.f32 %v2244_v29, %v2244_v29 }
0x14e6   :  { %v1364_v23 = vpop.xlane.xlu0 %1363 }
0x14e7   :  { %v1372_v24 = vmul.f32 %v2226_v16, %v1364_v23 }
0x14e9   :  { %v1373_v26 = vsub.f32 %v2208_v50, %v1372_v24 }
0x14eb   :  { %v1374_v28 = vmul.f32 %v1373_v26, %v1373_v26 }
0x14ed   :  { %1376 = vrot.lane.b32.xlu0 %v1374_v28, %s1864_s14 }
0x14f1   :  { %v1453_v30 = vpop.permute.xlu2 %1452 }
0x14f2   :  { %v1455_v32 = vsel %vm87_vm0, %v1453_v30, 0.0 }
0x14f3   :  { %1456 = vadd.xlane.f32.xlu2 %v1455_v32 }
0x14f5   :  { %1490 = vrot.lane.b32.xlu0 %v1488_v34, %s1865_s3 }
0x14f9   :  { %v1406_v44 = vpop.permute.xlu2 %1405 }
0x14fd   :  { %1398 = vrot.lane.b32.xlu0 %v1612_v41, %s1864_s14 }
0x1530   :  { %v1415_v49 = vpop.xlane.xlu1 %1414 }
0x1531   :  { %v1416_v50 = vmul.f32 %v1415_v49, %v2226_v16 }
0x1533   :  { %v2256_v33 = vsub.f32 %v1360_v42, %v1416_v50 }
0x1535   :  { %v1418_v52 = vmul.f32 %v2256_v33, %v2256_v33 }
0x155f   :  { %v1377_v45 = vpop.permute.xlu0 %1376 }
0x1560   :  { %v1379_v46 = vsel %vm87_vm0, %v1377_v45, 0.0 }
0x1561   :  { %1380 = vadd.xlane.f32.xlu1 %v1379_v46 }
0x1566   :  { %v1457_v38 = vpop.xlane.xlu2 %1456 }
0x1567   :  { %v1491_v53 = vpop.permute.xlu0 %1490  ;;  %v1458_v37 = vmul.f32 %v1457_v38, %v2226_v16 }
0x1568   :  { %v1493_v54 = vsel %vm87_vm0, %v1491_v53, 0.0 }
0x1569   :  { %v1459_v3 = vadd.f32 1e-05, %v1458_v37 }
0x156b   :  { %vm1466_vm13 = vweird.f32 %v1459_v3 }
0x156f   :  { %v2264_v31 = vpop.permute.xlu0 %1398 }
0x157a   :  { %1420 = vrot.lane.b32.xlu1 %v1418_v52, %s1864_s14 }
0x15a4   :  { %1494 = vadd.xlane.f32.xlu1 %v1493_v54 }
0x15bd   :  { %1471 = vrot.lane.b32.xlu1 %v1612_v41, %s1863_s13 }
0x15d4   :  { %v1381_v55 = vpop.xlane.xlu1 %1380 }
0x15d5   :  { %v1382_v56 = vmul.f32 %v1381_v55, %v2226_v16 }
0x15d7   :  { %v1383_v58 = vadd.f32 1e-05, %v1382_v56 }
0x15d9   :  { %1743 = vrsqrt.f32 %v1383_v58  ;;  %vm1390_vm7 = vweird.f32 %v1383_v58 }
0x15df   :  { %v1744_v57 = vpop.eup %1743 }
0x15e0   :  { %v1385_v59 = vmul.f32 %v1744_v57, %v1383_v58  ;;  %vm1391_vm6 = vweird.f32 %v1744_v57 }
0x15e1   :  { %vm1392_vm8 = vmor %vm1390_vm7, %vm1391_vm6 }
0x15e2   :  { %v1386_v60 = vmul.f32 %v1744_v57, %v1385_v59 }
0x15e4   :  { %v1387_v62 = vmul.f32 0.5, %v1386_v60 }
0x15e6   :  { %v1388_v61 = vsub.f32 1.5, %v1387_v62 }
0x15e8   :  { %v1389_v63 = vmul.f32 %v1744_v57, %v1388_v61 }
0x15ea   :  { %v1393_v51 = vsel %vm1392_vm8, %v1744_v57, %v1389_v63 }
0x15eb   :  { %v1394_v0 = vmul.f32 %v1393_v51, %v1373_v26 }
0x15ec   :  { %v1421_v1 = vpop.permute.xlu1 %1420 }
0x15ed   :  { %v1401_v48 = vmul.f32 %v2264_v31, %v1394_v0  ;;  %v1423_v4 = vsel %vm87_vm0, %v1421_v1, 0.0 }
0x15ee   :  { %1424 = vadd.xlane.f32.xlu0 %v1423_v4 }
0x15ef   :  { %v1408_v6 = vadd.f32 %v1406_v44, %v1401_v48 }
0x15f1   :  { %1512 = vrot.lane.b32.xlu2 %v1408_v6, %s1864_s14 }
0x1602   :  { %1475 = vrot.lane.b32.xlu0 %v1611_v20, %s1863_s13 }
0x1617   :  { %v1495_v2 = vpop.xlane.xlu1 %1494 }
0x1618   :  { %v1496_v40 = vmul.f32 %v1495_v2, %v2226_v16 }
0x161a   :  { %v1497_v43 = vadd.f32 1e-05, %v1496_v40 }
0x161c   :  { %1745 = vrsqrt.f32 %v1497_v43  ;;  %vm1504_vm11 = vweird.f32 %v1497_v43 }
0x161d   :  { %1747 = vrsqrt.f32 %v1459_v3 }
0x1622   :  { %v1746_v8 = vpop.eup %1745 }
0x1623   :  { %v1748_v5 = vpop.eup %1747  ;;  %v1499_v39 = vmul.f32 %v1746_v8, %v1497_v43  ;;  %vm1505_vm9 = vweird.f32 %v1746_v8 }
0x1624   :  { %v1461_v9 = vmul.f32 %v1748_v5, %v1459_v3  ;;  %vm1467_vm10 = vweird.f32 %v1748_v5  ;;  %vm1506_vm12 = vmor %vm1504_vm11, %vm1505_vm9 }
0x1625   :  { %v1500_v42 = vmul.f32 %v1746_v8, %v1499_v39  ;;  %vm1468_vm14 = vmor %vm1466_vm13, %vm1467_vm10 }
0x1626   :  { %v1462_v7 = vmul.f32 %v1748_v5, %v1461_v9 }
0x1627   :  { %v1501_v11 = vmul.f32 0.5, %v1500_v42 }
0x1628   :  { %v1463_v35 = vmul.f32 0.5, %v1462_v7 }
0x1629   :  { %v1502_v13 = vsub.f32 1.5, %v1501_v11 }
0x162a   :  { %v1464_v15 = vsub.f32 1.5, %v1463_v35 }
0x162b   :  { %v1503_v10 = vmul.f32 %v1746_v8, %v1502_v13 }
0x162c   :  { %v1465_v47 = vmul.f32 %v1748_v5, %v1464_v15 }
0x162d   :  { %v1507_v19 = vsel %vm1506_vm12, %v1746_v8, %v1503_v10 }
0x162e   :  { %v1469_v21 = vsel %vm1468_vm14, %v1748_v5, %v1465_v47  ;;  %v1508_v22 = vmul.f32 %v1507_v19, %v2244_v29 }
0x162f   :  { %v1470_v24 = vmul.f32 %v1469_v21, %v2230_v18 }
0x164b   :  { %v1513_v49 = vpop.permute.xlu2 %1512 }
0x1661   :  { %v1425_v12 = vpop.xlane.xlu0 %1424 }
0x1662   :  { %v1426_v36 = vmul.f32 %v1425_v12, %v2226_v16  ;;  %v1472_v16 = vpop.permute.xlu1 %1471 }
0x1663   :  { %v1474_v26 = vmul.f32 %v1472_v16, %v1470_v24  ;;  %v1509_v27 = vmul.f32 %v1508_v22, %v1472_v16 }
0x1664   :  { %v1427_v14 = vadd.f32 1e-05, %v1426_v36 }
0x1666   :  { %1749 = vrsqrt.f32 %v1427_v14  ;;  %vm1434_vm1 = vweird.f32 %v1427_v14 }
0x166c   :  { %v1750_v17 = vpop.eup %1749 }
0x166d   :  { %v1429_v20 = vmul.f32 %v1750_v17, %v1427_v14  ;;  %vm1435_vm15 = vweird.f32 %v1750_v17 }
0x166e   :  { %vm1436_vm2 = vmor %vm1434_vm1, %vm1435_vm15 }
0x166f   :  { %v1430_v23 = vmul.f32 %v1750_v17, %v1429_v20 }
0x1671   :  { %v1431_v25 = vmul.f32 0.5, %v1430_v23 }
0x1673   :  { %v1432_v28 = vsub.f32 1.5, %v1431_v25 }
0x1674   :  { %v1476_v30 = vpop.permute.xlu0 %1475 }
0x1675   :  { %v1433_v32 = vmul.f32 %v1750_v17, %v1432_v28  ;;  %v1478_v34 = vadd.f32 %v1476_v30, %v1474_v26  ;;  %v1510_v41 = vadd.f32 %v1509_v27, %v1476_v30 }
0x1677   :  { %v1437_v45 = vsel %vm1436_vm2, %v1750_v17, %v1433_v32  ;;  %1520 = vrot.lane.b32.xlu1 %v1478_v34, %s1863_s13  ;;  %1524 = vrot.lane.b32.xlu2 %v1510_v41, %s1864_s14 }
0x1678   :  { %v1438_v29 = vmul.f32 %v1437_v45, %v2256_v33 }
0x167a   :  { %v1439_v18 = vmul.f32 %v1438_v29, %v2264_v31 }
0x167c   :  { %v1440_v46 = vadd.f32 %v1439_v18, %v1406_v44 }
0x167e   :  { %1516 = vrot.lane.b32.xlu0 %v1440_v46, %s1865_s3 }
0x16d1   :  { %v1525_v54 = vpop.permute.xlu2 %1524 }
0x16e9   :  { %v1521_v52 = vpop.permute.xlu1 %1520 }
0x16f0   :  { %v1517_v50 = vpop.permute.xlu0 %1516 }
0x16f1   :  { %v1527_v53 = vsel %vm87_vm0, %v1513_v49, %v1517_v50 }
0x16f2   :  { %v1529_v33 = vsel %vm1528_vm3, %v1527_v53, %v1521_v52 }
0x16f3   :  { %v1531_v55 = vsel %vm1530_vm4, %v1529_v33, %v1525_v54 }
0x16f4   :  { %1532 = vst [vmem:[#allocation9] sm:$0xff] %v1531_v55 }
0x16f5   :  { %1543 = dma.vmem_to_hbm [thread:$0]  %s1539_s24, 128, %s1541_s27, [#allocation5]  }
0x16f6   :  { %1855 = dma.done.wait [#allocation5], 128  }
0x16f7   :  { %1856 = vsyncadd [#allocation5], 4294967168 }
0x16f8   :  { %1548 = vsyncpa [#allocation4], 1 }
0x16f9   :  { %1549 = vsyncpa [#allocation7], 1 }
0x16fa   :  { %1550 = vsyncpa [#allocation5], 1 }

</bundles_post_ra>
